<compile_context>
chip_gen: v5e
topology: v5e:2x2
jax: 0.10.0
libtpu: 0.0.40
codegen_flags: <defaults>
</compile_context>

<pallas_src>
import functools
import math

import jax
import jax.numpy as jnp
from jax.experimental import pallas as pl
from jax.experimental.pallas import tpu as pltpu

# ----------------------------- model config (small, synthetic) ----------------
VOCAB = 100
VOCAB_PAD = 128          # pad vocab to a full lane tile for the one-hot gather matmul
MAX_POS = 16
TYPE_VOCAB = 2
HIDDEN = 32
N_HEADS = 4
HEAD_DIM = HIDDEN // N_HEADS
INTERMEDIATE = 64
N_LAYERS = 2
N_LABELS = 2
LANE_PAD = 128           # lane-dense classifier output width (sliced to N_LABELS outside)
LN_EPS = 1e-12           # BERT default

EMB_ROWS = VOCAB_PAD + MAX_POS          # combined [word_emb_pad ; pos_emb+type_emb[0]] slab

# row-slab layout (one zero-padded 128-lane row per 1-D parameter)
ROW_EMB_G, ROW_EMB_B, ROW_POOL_B, ROW_CLS_B = 0, 1, 2, 3
ROW_LAYER0 = 4
ROWS_PER_LAYER = 8       # bqkv, bo, ln1_g, ln1_b, b1, b2, ln2_g, ln2_b
NROWS = ROW_LAYER0 + N_LAYERS * ROWS_PER_LAYER

N_INPUTS = 7             # idx, mask_bias, emb, rows, lwa, lw2, headw


# ----------------------------- in-kernel helpers (pure value functions) --------
def _ln(x, g, b):
    """LayerNorm over the last axis."""
    mean = jnp.mean(x, axis=-1, keepdims=True)
    var = jnp.mean((x - mean) ** 2, axis=-1, keepdims=True)
    return (x - mean) * jax.lax.rsqrt(var + LN_EPS) * g + b


def _gelu(x):
    # TODO(synk): HF BERT uses exact erf-GELU; tanh approximation used here.
    c = math.sqrt(2.0 / math.pi)
    return 0.5 * x * (1.0 + jnp.tanh(c * (x + 0.044715 * x * x * x)))


# ----------------------------- fused forward kernel ----------------------------
def _forward_kernel(idx_ref, bias_ref, emb_ref, rows_ref, lwa_ref, lw2_ref,
                    headw_ref, out_ref, *, B, S):
    BS = B * S

    def row(r, w):
        return rows_ref[r:r + 1, :w]                               # (1, w), static slice

    # ---- embeddings: word + pos(+type) via ONE two-hot matmul on the MXU ----
    idx = idx_ref[...]                                             # (BS, 2) int32
    iota = jax.lax.broadcasted_iota(jnp.int32, (BS, EMB_ROWS), 1)
    onehot = ((iota == idx[:, 0:1]).astype(jnp.float32)
              + (iota == idx[:, 1:2]).astype(jnp.float32))         # two hot columns per row
    x = jnp.dot(onehot, emb_ref[...], preferred_element_type=jnp.float32)   # (BS, H)
    x = _ln(x, row(ROW_EMB_G, HIDDEN), row(ROW_EMB_B, HIDDEN))

    bias = bias_ref[...]                                           # (nH, BS, BS), prebuilt
    scale = 1.0 / math.sqrt(HEAD_DIM)

    for li in range(N_LAYERS):
        rb = ROW_LAYER0 + li * ROWS_PER_LAYER
        lwa = lwa_ref[li]                                          # (H, 3H + H + I)
        wqkv = lwa[:, :3 * HIDDEN]
        wo = lwa[:, 3 * HIDDEN:4 * HIDDEN]
        w1 = lwa[:, 4 * HIDDEN:]
        w2 = lw2_ref[li]                                           # (I, H)

        # fused QKV projection: one (H, 3H) matmul
        qkv = jnp.dot(x, wqkv, preferred_element_type=jnp.float32) + row(rb + 0, 3 * HIDDEN)

        def split(base, _qkv=qkv):
            return jnp.stack(
                [_qkv[:, base + h * HEAD_DIM: base + (h + 1) * HEAD_DIM]
                 for h in range(N_HEADS)], axis=0)                 # (nH, BS, dH)

        qh = split(0)
        kh = split(HIDDEN)
        vh = split(2 * HIDDEN)

        # all batches at once per head; cross-batch pairs are masked by `bias`
        s = jnp.einsum("hqd,hkd->hqk", qh, kh,
                       preferred_element_type=jnp.float32) * scale + bias    # (nH, BS, BS)
        m = jnp.max(s, axis=-1, keepdims=True)
        p = jnp.exp(s - m)
        p = p * pl.reciprocal(jnp.sum(p, axis=-1, keepdims=True))            # exact
        ctx = jnp.einsum("hqk,hkd->hqd", p, vh,
                         preferred_element_type=jnp.float32)                 # (nH, BS, dH)

        # merge heads: single concat along lanes (head-major column order)
        merged = jnp.concatenate([ctx[h] for h in range(N_HEADS)], axis=-1)  # (BS, H)

        attn = jnp.dot(merged, wo, preferred_element_type=jnp.float32) + row(rb + 1, HIDDEN)
        x = _ln(x + attn, row(rb + 2, HIDDEN), row(rb + 3, HIDDEN))

        h1 = _gelu(jnp.dot(x, w1, preferred_element_type=jnp.float32)
                   + row(rb + 4, INTERMEDIATE))
        h2 = jnp.dot(h1, w2, preferred_element_type=jnp.float32) + row(rb + 5, HIDDEN)
        x = _ln(x + h2, row(rb + 6, HIDDEN), row(rb + 7, HIDDEN))

    # ---- pooler: pick CLS rows via one-hot selection matmul (bulk MXU op) ----
    sel_lane = jax.lax.broadcasted_iota(jnp.int32, (B, BS), 1)
    sel_tgt = jax.lax.broadcasted_iota(jnp.int32, (B, BS), 0) * S
    sel = (sel_lane == sel_tgt).astype(jnp.float32)                # (B, BS), hot at b*S
    cls = jnp.dot(sel, x, preferred_element_type=jnp.float32)      # (B, H)

    clsw = headw_ref[:, :LANE_PAD]                                 # (H, 128) padded classifier
    poolw = headw_ref[:, LANE_PAD:LANE_PAD + HIDDEN]               # (H, H)
    pooled = jnp.tanh(
        jnp.dot(cls, poolw, preferred_element_type=jnp.float32) + row(ROW_POOL_B, HIDDEN))
    out_ref[...] = (
        jnp.dot(pooled, clsw, preferred_element_type=jnp.float32) + row(ROW_CLS_B, LANE_PAD))


# ----------------------------- parameter construction --------------------------
def init_params(key):
    def nrm(k, shape):
        return 0.02 * jax.random.normal(k, shape, dtype=jnp.float32)

    keys = jax.random.split(key, 8 + N_LAYERS)
    params = {
        "word_emb": nrm(keys[0], (VOCAB, HIDDEN)),
        "pos_emb": nrm(keys[1], (MAX_POS, HIDDEN)),
        "type_emb": nrm(keys[2], (TYPE_VOCAB, HIDDEN)),
        "emb_ln_g": jnp.ones((HIDDEN,), jnp.float32),
        "emb_ln_b": jnp.zeros((HIDDEN,), jnp.float32),
        "pool_w": nrm(keys[3], (HIDDEN, HIDDEN)),
        "pool_b": jnp.zeros((HIDDEN,), jnp.float32),
        "cls_w": nrm(keys[4], (HIDDEN, N_LABELS)),
        "cls_b": jnp.zeros((N_LABELS,), jnp.float32),
        "layers": [],
    }
    for li in range(N_LAYERS):
        lk = jax.random.split(keys[8 + li], 6)
        params["layers"].append({
            "wq": nrm(lk[0], (HIDDEN, HIDDEN)), "bq": jnp.zeros((HIDDEN,), jnp.float32),
            "wk": nrm(lk[1], (HIDDEN, HIDDEN)), "bk": jnp.zeros((HIDDEN,), jnp.float32),
            "wv": nrm(lk[2], (HIDDEN, HIDDEN)), "bv": jnp.zeros((HIDDEN,), jnp.float32),
            "wo": nrm(lk[3], (HIDDEN, HIDDEN)), "bo": jnp.zeros((HIDDEN,), jnp.float32),
            "ln1_g": jnp.ones((HIDDEN,), jnp.float32), "ln1_b": jnp.zeros((HIDDEN,), jnp.float32),
            "w1": nrm(lk[4], (HIDDEN, INTERMEDIATE)), "b1": jnp.zeros((INTERMEDIATE,), jnp.float32),
            "w2": nrm(lk[5], (INTERMEDIATE, HIDDEN)), "b2": jnp.zeros((HIDDEN,), jnp.float32),
            "ln2_g": jnp.ones((HIDDEN,), jnp.float32), "ln2_b": jnp.zeros((HIDDEN,), jnp.float32),
        })
    return params


def pack_params(p):
    """Pack params into a small number of VMEM-friendly slabs (7 kernel inputs total)."""
    L = p["layers"]

    # embedding slab: [word_emb padded to 128 rows ; pos_emb + type_emb[0]]
    word_pad = jnp.zeros((VOCAB_PAD, HIDDEN), jnp.float32).at[:VOCAB].set(p["word_emb"])
    pos_type = p["pos_emb"] + p["type_emb"][0][None, :]            # token_type_ids == 0 folded
    emb = jnp.concatenate([word_pad, pos_type], axis=0)            # (EMB_ROWS, H)

    # rows slab: every 1-row parameter zero-padded to 128 lanes
    def pad_row(v):
        return jnp.zeros((1, LANE_PAD), jnp.float32).at[0, :v.shape[0]].set(v)

    rows = [pad_row(p["emb_ln_g"]), pad_row(p["emb_ln_b"]),
            pad_row(p["pool_b"]), pad_row(p["cls_b"])]
    for l in L:
        rows += [pad_row(jnp.concatenate([l["bq"], l["bk"], l["bv"]])),
                 pad_row(l["bo"]), pad_row(l["ln1_g"]), pad_row(l["ln1_b"]),
                 pad_row(l["b1"]), pad_row(l["b2"]),
                 pad_row(l["ln2_g"]), pad_row(l["ln2_b"])]
    rows = jnp.concatenate(rows, axis=0)                           # (NROWS, 128)
    assert rows.shape == (NROWS, LANE_PAD)

    # per-layer (H x *) matrices packed as [wqkv | wo | w1], plus stacked w2
    lwa = jnp.stack(
        [jnp.concatenate([l["wq"], l["wk"], l["wv"], l["wo"], l["w1"]], axis=1) for l in L],
        axis=0)                                                    # (L, H, 3H + H + I)
    lw2 = jnp.stack([l["w2"] for l in L], axis=0)                  # (L, I, H)

    # head slab: [cls_w padded to 128 lanes | pool_w]
    cls_w_pad = jnp.zeros((HIDDEN, LANE_PAD), jnp.float32).at[:, :N_LABELS].set(p["cls_w"])
    headw = jnp.concatenate([cls_w_pad, p["pool_w"]], axis=1)      # (H, 128 + H)

    return (emb, rows, lwa, lw2, headw)


# ----------------------------- forward pass (TextClassifier.forward) -----------
@jax.jit
def text_classifier_forward(packed, input_ids, attention_mask):
    B, S = input_ids.shape
    BS = B * S
    assert S <= MAX_POS

    # token-id / position-id pairs for the two-hot embedding gather
    # (ids are assumed < VOCAB; out-of-range ids map to zero embeddings)
    pos = jnp.arange(BS, dtype=jnp.int32) % S
    idx = jnp.stack([input_ids.reshape(BS).astype(jnp.int32), VOCAB_PAD + pos], axis=1)

    # additive attention bias, precomputed in the wrapper:
    #   -1e9 for masked keys AND for cross-batch (query, key) pairs,
    # pre-broadcast over heads so the kernel just adds it.
    batch_ids = jnp.arange(BS, dtype=jnp.int32) // S
    key_ok = attention_mask.reshape(BS).astype(jnp.int32) > 0
    valid = (batch_ids[:, None] == batch_ids[None, :]) & key_ok[None, :]
    mask_bias = jnp.where(valid, 0.0, -1e9).astype(jnp.float32)    # (BS, BS)
    mask_bias = jnp.broadcast_to(mask_bias[None], (N_HEADS, BS, BS))

    emb, rows, lwa, lw2, headw = packed
    out = pl.pallas_call(
        functools.partial(_forward_kernel, B=B, S=S),
        out_shape=jax.ShapeDtypeStruct((B, LANE_PAD), jnp.float32),
        in_specs=[pl.BlockSpec(memory_space=pltpu.MemorySpace.VMEM)] * N_INPUTS,
        out_specs=pl.BlockSpec(memory_space=pltpu.MemorySpace.VMEM),
    )(idx, mask_bias, emb, rows, lwa, lw2, headw)
    return out[:, :N_LABELS]                       # (B, num_labels=2)


# ----------------------------- pure-JAX reference (for validation) -------------
def _reference_forward(params, input_ids, attention_mask):
    B, S = input_ids.shape
    we = params["word_emb"][input_ids]
    pe = params["pos_emb"][:S]
    te = params["type_emb"][0]
    x = (we + pe[None, :, :] + te[None, None, :]).reshape(B * S, HIDDEN)

    def ln(x, g, b):
        m = x.mean(-1, keepdims=True)
        v = ((x - m) ** 2).mean(-1, keepdims=True)
        return (x - m) / jnp.sqrt(v + LN_EPS) * g + b

    x = ln(x, params["emb_ln_g"], params["emb_ln_b"])
    bias = (1.0 - attention_mask.astype(jnp.float32)) * -1e9
    scale = 1.0 / math.sqrt(HEAD_DIM)
    for l in params["layers"]:
        q = x @ l["wq"] + l["bq"]
        k = x @ l["wk"] + l["bk"]
        v = x @ l["wv"] + l["bv"]
        sh = lambda t: t.reshape(B, S, N_HEADS, HEAD_DIM).transpose(0, 2, 1, 3)
        q, k, v = sh(q), sh(k), sh(v)
        s = jnp.einsum("bhqd,bhkd->bhqk", q, k) * scale + bias[:, None, None, :]
        p = jax.nn.softmax(s, axis=-1)
        ctx = jnp.einsum("bhqk,bhkd->bhqd", p, v).transpose(0, 2, 1, 3).reshape(B * S, HIDDEN)
        x = ln(x + ctx @ l["wo"] + l["bo"], l["ln1_g"], l["ln1_b"])
        h = _gelu(x @ l["w1"] + l["b1"]) @ l["w2"] + l["b2"]
        x = ln(x + h, l["ln2_g"], l["ln2_b"])
    cls = x.reshape(B, S, HIDDEN)[:, 0]
    pooled = jnp.tanh(cls @ params["pool_w"] + params["pool_b"])
    return pooled @ params["cls_w"] + params["cls_b"]


# ----------------------------- main --------------------------------------------
if __name__ == "__main__":
    key = jax.random.PRNGKey(0)
    pkey, ikey = jax.random.split(key)

    params = init_params(pkey)
    packed = pack_params(params)

    B, S = 2, 8
    input_ids = jax.random.randint(ikey, (B, S), 0, VOCAB, dtype=jnp.int32)
    attention_mask = jnp.array(
        [[1, 1, 1, 1, 1, 1, 1, 1],
         [1, 1, 1, 1, 1, 1, 0, 0]], dtype=jnp.int32)

    logits = text_classifier_forward(packed, input_ids, attention_mask)
    logits = jax.block_until_ready(logits)
    assert logits.shape == (B, N_LABELS)
    assert bool(jnp.all(jnp.isfinite(logits)))

    ref = _reference_forward(params, input_ids, attention_mask)
    assert jnp.allclose(logits, ref, atol=2e-3, rtol=2e-2)
    print("KERNEL_OK")
</pallas_src>

<mosaic_0001>
module attributes {stable_mosaic.version = 11 : i64} {
  func.func @_forward_kernel(%arg0: memref<16x2xi32, #tpu.memory_space<vmem>>, %arg1: memref<4x16x16xf32, #tpu.memory_space<vmem>>, %arg2: memref<144x32xf32, #tpu.memory_space<vmem>>, %arg3: memref<20x128xf32, #tpu.memory_space<vmem>>, %arg4: memref<2x32x192xf32, #tpu.memory_space<vmem>>, %arg5: memref<2x64x32xf32, #tpu.memory_space<vmem>>, %arg6: memref<32x160xf32, #tpu.memory_space<vmem>>, %arg7: memref<2x128xf32, #tpu.memory_space<vmem>>) attributes {dimension_semantics = [], scalar_prefetch = 0 : i64, scratch_operands = 0 : i64, tpu.core_type = #tpu.core_type<tc>} {
    %c0 = arith.constant 0 : index
    %c0_0 = arith.constant 0 : index
    %0 = vector.load %arg0[%c0, %c0_0] : memref<16x2xi32, #tpu.memory_space<vmem>>, vector<16x2xi32>
    %1 = tpu.iota {dimensions = array<i32: 1>} : vector<16x144xi32>
    %2 = vector.extract_strided_slice %0 {offsets = [0, 0], sizes = [16, 1], strides = [1, 1]} : vector<16x2xi32> to vector<16x1xi32>
    %3 = vector.broadcast %2 : vector<16x1xi32> to vector<16x144xi32>
    %4 = arith.cmpi eq, %1, %3 : vector<16x144xi32>
    %5 = arith.extui %4 : vector<16x144xi1> to vector<16x144xi32>
    %6 = arith.sitofp %5 : vector<16x144xi32> to vector<16x144xf32>
    %7 = vector.extract_strided_slice %0 {offsets = [0, 1], sizes = [16, 1], strides = [1, 1]} : vector<16x2xi32> to vector<16x1xi32>
    %8 = vector.broadcast %7 : vector<16x1xi32> to vector<16x144xi32>
    %9 = arith.cmpi eq, %1, %8 : vector<16x144xi32>
    %10 = arith.extui %9 : vector<16x144xi1> to vector<16x144xi32>
    %11 = arith.sitofp %10 : vector<16x144xi32> to vector<16x144xf32>
    %12 = arith.addf %6, %11 : vector<16x144xf32>
    %c0_1 = arith.constant 0 : index
    %c0_2 = arith.constant 0 : index
    %13 = vector.load %arg2[%c0_1, %c0_2] : memref<144x32xf32, #tpu.memory_space<vmem>>, vector<144x32xf32>
    %cst = arith.constant dense<0.000000e+00> : vector<16x32xf32>
    %14 = tpu.matmul %12, %13, %cst {dimension_numbers = #tpu.dot_dimension_numbers<[1], [0], [0], [1], [0, 0, 1, 1], [], []>} : vector<16x144xf32>, vector<144x32xf32>, vector<16x32xf32> -> vector<16x32xf32>
    %c0_3 = arith.constant 0 : index
    %c0_4 = arith.constant 0 : index
    %15 = vector.load %arg3[%c0_3, %c0_4] : memref<20x128xf32, #tpu.memory_space<vmem>>, vector<1x32xf32>
    %c1 = arith.constant 1 : index
    %c0_5 = arith.constant 0 : index
    %16 = vector.load %arg3[%c1, %c0_5] : memref<20x128xf32, #tpu.memory_space<vmem>>, vector<1x32xf32>
    %cst_6 = arith.constant dense<0.000000e+00> : vector<16xf32>
    %17 = vector.multi_reduction <add>, %14, %cst_6 [1] : vector<16x32xf32> to vector<16xf32>
    %18 = vector.shape_cast %17 : vector<16xf32> to vector<16x1xf32>
    %cst_7 = arith.constant 3.200000e+01 : f32
    %19 = vector.broadcast %cst_7 : f32 to vector<16x1xf32>
    %20 = arith.divf %18, %19 : vector<16x1xf32>
    %21 = vector.broadcast %20 : vector<16x1xf32> to vector<16x32xf32>
    %22 = arith.subf %14, %21 : vector<16x32xf32>
    %23 = arith.mulf %22, %22 : vector<16x32xf32>
    %cst_8 = arith.constant dense<0.000000e+00> : vector<16xf32>
    %24 = vector.multi_reduction <add>, %23, %cst_8 [1] : vector<16x32xf32> to vector<16xf32>
    %25 = vector.shape_cast %24 : vector<16xf32> to vector<16x1xf32>
    %cst_9 = arith.constant 3.200000e+01 : f32
    %26 = vector.broadcast %cst_9 : f32 to vector<16x1xf32>
    %27 = arith.divf %25, %26 : vector<16x1xf32>
    %28 = vector.broadcast %20 : vector<16x1xf32> to vector<16x32xf32>
    %29 = arith.subf %14, %28 : vector<16x32xf32>
    %cst_10 = arith.constant 9.99999996E-13 : f32
    %30 = vector.broadcast %cst_10 : f32 to vector<16x1xf32>
    %31 = arith.addf %27, %30 : vector<16x1xf32>
    %32 = math.rsqrt %31 : vector<16x1xf32>
    %33 = vector.broadcast %32 : vector<16x1xf32> to vector<16x32xf32>
    %34 = arith.mulf %29, %33 : vector<16x32xf32>
    %35 = vector.broadcast %15 : vector<1x32xf32> to vector<16x32xf32>
    %36 = arith.mulf %34, %35 : vector<16x32xf32>
    %37 = vector.broadcast %16 : vector<1x32xf32> to vector<16x32xf32>
    %38 = arith.addf %36, %37 : vector<16x32xf32>
    %c0_11 = arith.constant 0 : index
    %c0_12 = arith.constant 0 : index
    %c0_13 = arith.constant 0 : index
    %39 = vector.load %arg1[%c0_11, %c0_12, %c0_13] : memref<4x16x16xf32, #tpu.memory_space<vmem>>, vector<4x16x16xf32>
    %c0_14 = arith.constant 0 : index
    %c0_15 = arith.constant 0 : index
    %c0_16 = arith.constant 0 : index
    %40 = vector.load %arg4[%c0_14, %c0_15, %c0_16] : memref<2x32x192xf32, #tpu.memory_space<vmem>>, vector<1x32x192xf32>
    %41 = vector.shape_cast %40 : vector<1x32x192xf32> to vector<32x192xf32>
    %42 = vector.extract_strided_slice %41 {offsets = [0, 0], sizes = [32, 96], strides = [1, 1]} : vector<32x192xf32> to vector<32x96xf32>
    %43 = vector.extract_strided_slice %41 {offsets = [0, 96], sizes = [32, 32], strides = [1, 1]} : vector<32x192xf32> to vector<32x32xf32>
    %44 = vector.extract_strided_slice %41 {offsets = [0, 128], sizes = [32, 64], strides = [1, 1]} : vector<32x192xf32> to vector<32x64xf32>
    %c0_17 = arith.constant 0 : index
    %c0_18 = arith.constant 0 : index
    %c0_19 = arith.constant 0 : index
    %45 = vector.load %arg5[%c0_17, %c0_18, %c0_19] : memref<2x64x32xf32, #tpu.memory_space<vmem>>, vector<1x64x32xf32>
    %46 = vector.shape_cast %45 : vector<1x64x32xf32> to vector<64x32xf32>
    %cst_20 = arith.constant dense<0.000000e+00> : vector<16x96xf32>
    %47 = tpu.matmul %38, %42, %cst_20 {dimension_numbers = #tpu.dot_dimension_numbers<[1], [0], [0], [1], [0, 0, 1, 1], [], []>} : vector<16x32xf32>, vector<32x96xf32>, vector<16x96xf32> -> vector<16x96xf32>
    %c4 = arith.constant 4 : index
    %c0_21 = arith.constant 0 : index
    %48 = vector.load %arg3[%c4, %c0_21] : memref<20x128xf32, #tpu.memory_space<vmem>>, vector<1x96xf32>
    %49 = vector.broadcast %48 : vector<1x96xf32> to vector<16x96xf32>
    %50 = arith.addf %47, %49 : vector<16x96xf32>
    %51 = vector.extract_strided_slice %50 {offsets = [0, 0], sizes = [16, 8], strides = [1, 1]} : vector<16x96xf32> to vector<16x8xf32>
    %52 = vector.extract_strided_slice %50 {offsets = [0, 8], sizes = [16, 8], strides = [1, 1]} : vector<16x96xf32> to vector<16x8xf32>
    %53 = vector.extract_strided_slice %50 {offsets = [0, 16], sizes = [16, 8], strides = [1, 1]} : vector<16x96xf32> to vector<16x8xf32>
    %54 = vector.extract_strided_slice %50 {offsets = [0, 24], sizes = [16, 8], strides = [1, 1]} : vector<16x96xf32> to vector<16x8xf32>
    %55 = vector.shape_cast %51 : vector<16x8xf32> to vector<1x16x8xf32>
    %56 = vector.shape_cast %52 : vector<16x8xf32> to vector<1x16x8xf32>
    %57 = vector.shape_cast %53 : vector<16x8xf32> to vector<1x16x8xf32>
    %58 = vector.shape_cast %54 : vector<16x8xf32> to vector<1x16x8xf32>
    %59 = tpu.concatenate %55, %56, %57, %58 in 0 : vector<1x16x8xf32>, vector<1x16x8xf32>, vector<1x16x8xf32>, vector<1x16x8xf32> -> vector<4x16x8xf32>
    %60 = vector.extract_strided_slice %50 {offsets = [0, 32], sizes = [16, 8], strides = [1, 1]} : vector<16x96xf32> to vector<16x8xf32>
    %61 = vector.extract_strided_slice %50 {offsets = [0, 40], sizes = [16, 8], strides = [1, 1]} : vector<16x96xf32> to vector<16x8xf32>
    %62 = vector.extract_strided_slice %50 {offsets = [0, 48], sizes = [16, 8], strides = [1, 1]} : vector<16x96xf32> to vector<16x8xf32>
    %63 = vector.extract_strided_slice %50 {offsets = [0, 56], sizes = [16, 8], strides = [1, 1]} : vector<16x96xf32> to vector<16x8xf32>
    %64 = vector.shape_cast %60 : vector<16x8xf32> to vector<1x16x8xf32>
    %65 = vector.shape_cast %61 : vector<16x8xf32> to vector<1x16x8xf32>
    %66 = vector.shape_cast %62 : vector<16x8xf32> to vector<1x16x8xf32>
    %67 = vector.shape_cast %63 : vector<16x8xf32> to vector<1x16x8xf32>
    %68 = tpu.concatenate %64, %65, %66, %67 in 0 : vector<1x16x8xf32>, vector<1x16x8xf32>, vector<1x16x8xf32>, vector<1x16x8xf32> -> vector<4x16x8xf32>
    %69 = vector.extract_strided_slice %50 {offsets = [0, 64], sizes = [16, 8], strides = [1, 1]} : vector<16x96xf32> to vector<16x8xf32>
    %70 = vector.extract_strided_slice %50 {offsets = [0, 72], sizes = [16, 8], strides = [1, 1]} : vector<16x96xf32> to vector<16x8xf32>
    %71 = vector.extract_strided_slice %50 {offsets = [0, 80], sizes = [16, 8], strides = [1, 1]} : vector<16x96xf32> to vector<16x8xf32>
    %72 = vector.extract_strided_slice %50 {offsets = [0, 88], sizes = [16, 8], strides = [1, 1]} : vector<16x96xf32> to vector<16x8xf32>
    %73 = vector.shape_cast %69 : vector<16x8xf32> to vector<1x16x8xf32>
    %74 = vector.shape_cast %70 : vector<16x8xf32> to vector<1x16x8xf32>
    %75 = vector.shape_cast %71 : vector<16x8xf32> to vector<1x16x8xf32>
    %76 = vector.shape_cast %72 : vector<16x8xf32> to vector<1x16x8xf32>
    %77 = tpu.concatenate %73, %74, %75, %76 in 0 : vector<1x16x8xf32>, vector<1x16x8xf32>, vector<1x16x8xf32>, vector<1x16x8xf32> -> vector<4x16x8xf32>
    "tpu.trace_start"() <{level = 10 : i32, message = "hqd,hkd->hqk"}> : () -> ()
    %cst_22 = arith.constant dense<0.000000e+00> : vector<4x16x16xf32>
    %78 = tpu.matmul %59, %68, %cst_22 {dimension_numbers = #tpu.dot_dimension_numbers<[2], [2], [1], [1], [0, 0, 0, 1, 1, 1], [0], [0]>} : vector<4x16x8xf32>, vector<4x16x8xf32>, vector<4x16x16xf32> -> vector<4x16x16xf32>
    "tpu.trace_stop"() : () -> ()
    %cst_23 = arith.constant 0.353553385 : f32
    %79 = vector.broadcast %cst_23 : f32 to vector<4x16x16xf32>
    %80 = arith.mulf %78, %79 : vector<4x16x16xf32>
    %81 = arith.addf %80, %39 : vector<4x16x16xf32>
    %cst_24 = arith.constant dense<0xFF800000> : vector<4x16xf32>
    %82 = vector.multi_reduction <maximumf>, %81, %cst_24 [2] : vector<4x16x16xf32> to vector<4x16xf32>
    %83 = vector.shape_cast %82 : vector<4x16xf32> to vector<4x16x1xf32>
    %84 = vector.broadcast %83 : vector<4x16x1xf32> to vector<4x16x16xf32>
    %85 = arith.subf %81, %84 : vector<4x16x16xf32>
    %86 = math.exp %85 : vector<4x16x16xf32>
    %cst_25 = arith.constant dense<0.000000e+00> : vector<4x16xf32>
    %87 = vector.multi_reduction <add>, %86, %cst_25 [2] : vector<4x16x16xf32> to vector<4x16xf32>
    %88 = vector.shape_cast %87 : vector<4x16xf32> to vector<4x16x1xf32>
    %89 = tpu.reciprocal %88 : vector<4x16x1xf32> -> vector<4x16x1xf32>
    %90 = vector.broadcast %89 : vector<4x16x1xf32> to vector<4x16x16xf32>
    %91 = arith.mulf %86, %90 : vector<4x16x16xf32>
    "tpu.trace_start"() <{level = 10 : i32, message = "hqk,hkd->hqd"}> : () -> ()
    %cst_26 = arith.constant dense<0.000000e+00> : vector<4x16x8xf32>
    %92 = tpu.matmul %91, %77, %cst_26 {dimension_numbers = #tpu.dot_dimension_numbers<[2], [1], [1], [2], [0, 0, 0, 1, 1, 2], [0], [0]>} : vector<4x16x16xf32>, vector<4x16x8xf32>, vector<4x16x8xf32> -> vector<4x16x8xf32>
    "tpu.trace_stop"() : () -> ()
    %93 = vector.extract_strided_slice %92 {offsets = [0, 0, 0], sizes = [1, 16, 8], strides = [1, 1, 1]} : vector<4x16x8xf32> to vector<1x16x8xf32>
    %94 = vector.shape_cast %93 : vector<1x16x8xf32> to vector<16x8xf32>
    %95 = vector.extract_strided_slice %92 {offsets = [1, 0, 0], sizes = [1, 16, 8], strides = [1, 1, 1]} : vector<4x16x8xf32> to vector<1x16x8xf32>
    %96 = vector.shape_cast %95 : vector<1x16x8xf32> to vector<16x8xf32>
    %97 = vector.extract_strided_slice %92 {offsets = [2, 0, 0], sizes = [1, 16, 8], strides = [1, 1, 1]} : vector<4x16x8xf32> to vector<1x16x8xf32>
    %98 = vector.shape_cast %97 : vector<1x16x8xf32> to vector<16x8xf32>
    %99 = vector.extract_strided_slice %92 {offsets = [3, 0, 0], sizes = [1, 16, 8], strides = [1, 1, 1]} : vector<4x16x8xf32> to vector<1x16x8xf32>
    %100 = vector.shape_cast %99 : vector<1x16x8xf32> to vector<16x8xf32>
    %101 = tpu.concatenate %94, %96, %98, %100 in 1 : vector<16x8xf32>, vector<16x8xf32>, vector<16x8xf32>, vector<16x8xf32> -> vector<16x32xf32>
    %cst_27 = arith.constant dense<0.000000e+00> : vector<16x32xf32>
    %102 = tpu.matmul %101, %43, %cst_27 {dimension_numbers = #tpu.dot_dimension_numbers<[1], [0], [0], [1], [0, 0, 1, 1], [], []>} : vector<16x32xf32>, vector<32x32xf32>, vector<16x32xf32> -> vector<16x32xf32>
    %c5 = arith.constant 5 : index
    %c0_28 = arith.constant 0 : index
    %103 = vector.load %arg3[%c5, %c0_28] : memref<20x128xf32, #tpu.memory_space<vmem>>, vector<1x32xf32>
    %104 = vector.broadcast %103 : vector<1x32xf32> to vector<16x32xf32>
    %105 = arith.addf %102, %104 : vector<16x32xf32>
    %106 = arith.addf %38, %105 : vector<16x32xf32>
    %c6 = arith.constant 6 : index
    %c0_29 = arith.constant 0 : index
    %107 = vector.load %arg3[%c6, %c0_29] : memref<20x128xf32, #tpu.memory_space<vmem>>, vector<1x32xf32>
    %c7 = arith.constant 7 : index
    %c0_30 = arith.constant 0 : index
    %108 = vector.load %arg3[%c7, %c0_30] : memref<20x128xf32, #tpu.memory_space<vmem>>, vector<1x32xf32>
    %cst_31 = arith.constant dense<0.000000e+00> : vector<16xf32>
    %109 = vector.multi_reduction <add>, %106, %cst_31 [1] : vector<16x32xf32> to vector<16xf32>
    %110 = vector.shape_cast %109 : vector<16xf32> to vector<16x1xf32>
    %cst_32 = arith.constant 3.200000e+01 : f32
    %111 = vector.broadcast %cst_32 : f32 to vector<16x1xf32>
    %112 = arith.divf %110, %111 : vector<16x1xf32>
    %113 = vector.broadcast %112 : vector<16x1xf32> to vector<16x32xf32>
    %114 = arith.subf %106, %113 : vector<16x32xf32>
    %115 = arith.mulf %114, %114 : vector<16x32xf32>
    %cst_33 = arith.constant dense<0.000000e+00> : vector<16xf32>
    %116 = vector.multi_reduction <add>, %115, %cst_33 [1] : vector<16x32xf32> to vector<16xf32>
    %117 = vector.shape_cast %116 : vector<16xf32> to vector<16x1xf32>
    %cst_34 = arith.constant 3.200000e+01 : f32
    %118 = vector.broadcast %cst_34 : f32 to vector<16x1xf32>
    %119 = arith.divf %117, %118 : vector<16x1xf32>
    %120 = vector.broadcast %112 : vector<16x1xf32> to vector<16x32xf32>
    %121 = arith.subf %106, %120 : vector<16x32xf32>
    %cst_35 = arith.constant 9.99999996E-13 : f32
    %122 = vector.broadcast %cst_35 : f32 to vector<16x1xf32>
    %123 = arith.addf %119, %122 : vector<16x1xf32>
    %124 = math.rsqrt %123 : vector<16x1xf32>
    %125 = vector.broadcast %124 : vector<16x1xf32> to vector<16x32xf32>
    %126 = arith.mulf %121, %125 : vector<16x32xf32>
    %127 = vector.broadcast %107 : vector<1x32xf32> to vector<16x32xf32>
    %128 = arith.mulf %126, %127 : vector<16x32xf32>
    %129 = vector.broadcast %108 : vector<1x32xf32> to vector<16x32xf32>
    %130 = arith.addf %128, %129 : vector<16x32xf32>
    %cst_36 = arith.constant dense<0.000000e+00> : vector<16x64xf32>
    %131 = tpu.matmul %130, %44, %cst_36 {dimension_numbers = #tpu.dot_dimension_numbers<[1], [0], [0], [1], [0, 0, 1, 1], [], []>} : vector<16x32xf32>, vector<32x64xf32>, vector<16x64xf32> -> vector<16x64xf32>
    %c8 = arith.constant 8 : index
    %c0_37 = arith.constant 0 : index
    %132 = vector.load %arg3[%c8, %c0_37] : memref<20x128xf32, #tpu.memory_space<vmem>>, vector<1x64xf32>
    %133 = vector.broadcast %132 : vector<1x64xf32> to vector<16x64xf32>
    %134 = arith.addf %131, %133 : vector<16x64xf32>
    %cst_38 = arith.constant 5.000000e-01 : f32
    %135 = vector.broadcast %cst_38 : f32 to vector<16x64xf32>
    %136 = arith.mulf %135, %134 : vector<16x64xf32>
    %cst_39 = arith.constant 4.471500e-02 : f32
    %137 = vector.broadcast %cst_39 : f32 to vector<16x64xf32>
    %138 = arith.mulf %137, %134 : vector<16x64xf32>
    %139 = arith.mulf %138, %134 : vector<16x64xf32>
    %140 = arith.mulf %139, %134 : vector<16x64xf32>
    %141 = arith.addf %134, %140 : vector<16x64xf32>
    %cst_40 = arith.constant 0.797884583 : f32
    %142 = vector.broadcast %cst_40 : f32 to vector<16x64xf32>
    %143 = arith.mulf %142, %141 : vector<16x64xf32>
    %144 = math.tanh %143 : vector<16x64xf32>
    %cst_41 = arith.constant 1.000000e+00 : f32
    %145 = vector.broadcast %cst_41 : f32 to vector<16x64xf32>
    %146 = arith.addf %145, %144 : vector<16x64xf32>
    %147 = arith.mulf %136, %146 : vector<16x64xf32>
    %cst_42 = arith.constant dense<0.000000e+00> : vector<16x32xf32>
    %148 = tpu.matmul %147, %46, %cst_42 {dimension_numbers = #tpu.dot_dimension_numbers<[1], [0], [0], [1], [0, 0, 1, 1], [], []>} : vector<16x64xf32>, vector<64x32xf32>, vector<16x32xf32> -> vector<16x32xf32>
    %c9 = arith.constant 9 : index
    %c0_43 = arith.constant 0 : index
    %149 = vector.load %arg3[%c9, %c0_43] : memref<20x128xf32, #tpu.memory_space<vmem>>, vector<1x32xf32>
    %150 = vector.broadcast %149 : vector<1x32xf32> to vector<16x32xf32>
    %151 = arith.addf %148, %150 : vector<16x32xf32>
    %152 = arith.addf %130, %151 : vector<16x32xf32>
    %c10 = arith.constant 10 : index
    %c0_44 = arith.constant 0 : index
    %153 = vector.load %arg3[%c10, %c0_44] : memref<20x128xf32, #tpu.memory_space<vmem>>, vector<1x32xf32>
    %c11 = arith.constant 11 : index
    %c0_45 = arith.constant 0 : index
    %154 = vector.load %arg3[%c11, %c0_45] : memref<20x128xf32, #tpu.memory_space<vmem>>, vector<1x32xf32>
    %cst_46 = arith.constant dense<0.000000e+00> : vector<16xf32>
    %155 = vector.multi_reduction <add>, %152, %cst_46 [1] : vector<16x32xf32> to vector<16xf32>
    %156 = vector.shape_cast %155 : vector<16xf32> to vector<16x1xf32>
    %cst_47 = arith.constant 3.200000e+01 : f32
    %157 = vector.broadcast %cst_47 : f32 to vector<16x1xf32>
    %158 = arith.divf %156, %157 : vector<16x1xf32>
    %159 = vector.broadcast %158 : vector<16x1xf32> to vector<16x32xf32>
    %160 = arith.subf %152, %159 : vector<16x32xf32>
    %161 = arith.mulf %160, %160 : vector<16x32xf32>
    %cst_48 = arith.constant dense<0.000000e+00> : vector<16xf32>
    %162 = vector.multi_reduction <add>, %161, %cst_48 [1] : vector<16x32xf32> to vector<16xf32>
    %163 = vector.shape_cast %162 : vector<16xf32> to vector<16x1xf32>
    %cst_49 = arith.constant 3.200000e+01 : f32
    %164 = vector.broadcast %cst_49 : f32 to vector<16x1xf32>
    %165 = arith.divf %163, %164 : vector<16x1xf32>
    %166 = vector.broadcast %158 : vector<16x1xf32> to vector<16x32xf32>
    %167 = arith.subf %152, %166 : vector<16x32xf32>
    %cst_50 = arith.constant 9.99999996E-13 : f32
    %168 = vector.broadcast %cst_50 : f32 to vector<16x1xf32>
    %169 = arith.addf %165, %168 : vector<16x1xf32>
    %170 = math.rsqrt %169 : vector<16x1xf32>
    %171 = vector.broadcast %170 : vector<16x1xf32> to vector<16x32xf32>
    %172 = arith.mulf %167, %171 : vector<16x32xf32>
    %173 = vector.broadcast %153 : vector<1x32xf32> to vector<16x32xf32>
    %174 = arith.mulf %172, %173 : vector<16x32xf32>
    %175 = vector.broadcast %154 : vector<1x32xf32> to vector<16x32xf32>
    %176 = arith.addf %174, %175 : vector<16x32xf32>
    %c1_51 = arith.constant 1 : index
    %c0_52 = arith.constant 0 : index
    %c0_53 = arith.constant 0 : index
    %177 = vector.load %arg4[%c1_51, %c0_52, %c0_53] : memref<2x32x192xf32, #tpu.memory_space<vmem>>, vector<1x32x192xf32>
    %178 = vector.shape_cast %177 : vector<1x32x192xf32> to vector<32x192xf32>
    %179 = vector.extract_strided_slice %178 {offsets = [0, 0], sizes = [32, 96], strides = [1, 1]} : vector<32x192xf32> to vector<32x96xf32>
    %180 = vector.extract_strided_slice %178 {offsets = [0, 96], sizes = [32, 32], strides = [1, 1]} : vector<32x192xf32> to vector<32x32xf32>
    %181 = vector.extract_strided_slice %178 {offsets = [0, 128], sizes = [32, 64], strides = [1, 1]} : vector<32x192xf32> to vector<32x64xf32>
    %c1_54 = arith.constant 1 : index
    %c0_55 = arith.constant 0 : index
    %c0_56 = arith.constant 0 : index
    %182 = vector.load %arg5[%c1_54, %c0_55, %c0_56] : memref<2x64x32xf32, #tpu.memory_space<vmem>>, vector<1x64x32xf32>
    %183 = vector.shape_cast %182 : vector<1x64x32xf32> to vector<64x32xf32>
    %cst_57 = arith.constant dense<0.000000e+00> : vector<16x96xf32>
    %184 = tpu.matmul %176, %179, %cst_57 {dimension_numbers = #tpu.dot_dimension_numbers<[1], [0], [0], [1], [0, 0, 1, 1], [], []>} : vector<16x32xf32>, vector<32x96xf32>, vector<16x96xf32> -> vector<16x96xf32>
    %c12 = arith.constant 12 : index
    %c0_58 = arith.constant 0 : index
    %185 = vector.load %arg3[%c12, %c0_58] : memref<20x128xf32, #tpu.memory_space<vmem>>, vector<1x96xf32>
    %186 = vector.broadcast %185 : vector<1x96xf32> to vector<16x96xf32>
    %187 = arith.addf %184, %186 : vector<16x96xf32>
    %188 = vector.extract_strided_slice %187 {offsets = [0, 0], sizes = [16, 8], strides = [1, 1]} : vector<16x96xf32> to vector<16x8xf32>
    %189 = vector.extract_strided_slice %187 {offsets = [0, 8], sizes = [16, 8], strides = [1, 1]} : vector<16x96xf32> to vector<16x8xf32>
    %190 = vector.extract_strided_slice %187 {offsets = [0, 16], sizes = [16, 8], strides = [1, 1]} : vector<16x96xf32> to vector<16x8xf32>
    %191 = vector.extract_strided_slice %187 {offsets = [0, 24], sizes = [16, 8], strides = [1, 1]} : vector<16x96xf32> to vector<16x8xf32>
    %192 = vector.shape_cast %188 : vector<16x8xf32> to vector<1x16x8xf32>
    %193 = vector.shape_cast %189 : vector<16x8xf32> to vector<1x16x8xf32>
    %194 = vector.shape_cast %190 : vector<16x8xf32> to vector<1x16x8xf32>
    %195 = vector.shape_cast %191 : vector<16x8xf32> to vector<1x16x8xf32>
    %196 = tpu.concatenate %192, %193, %194, %195 in 0 : vector<1x16x8xf32>, vector<1x16x8xf32>, vector<1x16x8xf32>, vector<1x16x8xf32> -> vector<4x16x8xf32>
    %197 = vector.extract_strided_slice %187 {offsets = [0, 32], sizes = [16, 8], strides = [1, 1]} : vector<16x96xf32> to vector<16x8xf32>
    %198 = vector.extract_strided_slice %187 {offsets = [0, 40], sizes = [16, 8], strides = [1, 1]} : vector<16x96xf32> to vector<16x8xf32>
    %199 = vector.extract_strided_slice %187 {offsets = [0, 48], sizes = [16, 8], strides = [1, 1]} : vector<16x96xf32> to vector<16x8xf32>
    %200 = vector.extract_strided_slice %187 {offsets = [0, 56], sizes = [16, 8], strides = [1, 1]} : vector<16x96xf32> to vector<16x8xf32>
    %201 = vector.shape_cast %197 : vector<16x8xf32> to vector<1x16x8xf32>
    %202 = vector.shape_cast %198 : vector<16x8xf32> to vector<1x16x8xf32>
    %203 = vector.shape_cast %199 : vector<16x8xf32> to vector<1x16x8xf32>
    %204 = vector.shape_cast %200 : vector<16x8xf32> to vector<1x16x8xf32>
    %205 = tpu.concatenate %201, %202, %203, %204 in 0 : vector<1x16x8xf32>, vector<1x16x8xf32>, vector<1x16x8xf32>, vector<1x16x8xf32> -> vector<4x16x8xf32>
    %206 = vector.extract_strided_slice %187 {offsets = [0, 64], sizes = [16, 8], strides = [1, 1]} : vector<16x96xf32> to vector<16x8xf32>
    %207 = vector.extract_strided_slice %187 {offsets = [0, 72], sizes = [16, 8], strides = [1, 1]} : vector<16x96xf32> to vector<16x8xf32>
    %208 = vector.extract_strided_slice %187 {offsets = [0, 80], sizes = [16, 8], strides = [1, 1]} : vector<16x96xf32> to vector<16x8xf32>
    %209 = vector.extract_strided_slice %187 {offsets = [0, 88], sizes = [16, 8], strides = [1, 1]} : vector<16x96xf32> to vector<16x8xf32>
    %210 = vector.shape_cast %206 : vector<16x8xf32> to vector<1x16x8xf32>
    %211 = vector.shape_cast %207 : vector<16x8xf32> to vector<1x16x8xf32>
    %212 = vector.shape_cast %208 : vector<16x8xf32> to vector<1x16x8xf32>
    %213 = vector.shape_cast %209 : vector<16x8xf32> to vector<1x16x8xf32>
    %214 = tpu.concatenate %210, %211, %212, %213 in 0 : vector<1x16x8xf32>, vector<1x16x8xf32>, vector<1x16x8xf32>, vector<1x16x8xf32> -> vector<4x16x8xf32>
    "tpu.trace_start"() <{level = 10 : i32, message = "hqd,hkd->hqk"}> : () -> ()
    %cst_59 = arith.constant dense<0.000000e+00> : vector<4x16x16xf32>
    %215 = tpu.matmul %196, %205, %cst_59 {dimension_numbers = #tpu.dot_dimension_numbers<[2], [2], [1], [1], [0, 0, 0, 1, 1, 1], [0], [0]>} : vector<4x16x8xf32>, vector<4x16x8xf32>, vector<4x16x16xf32> -> vector<4x16x16xf32>
    "tpu.trace_stop"() : () -> ()
    %cst_60 = arith.constant 0.353553385 : f32
    %216 = vector.broadcast %cst_60 : f32 to vector<4x16x16xf32>
    %217 = arith.mulf %215, %216 : vector<4x16x16xf32>
    %218 = arith.addf %217, %39 : vector<4x16x16xf32>
    %cst_61 = arith.constant dense<0xFF800000> : vector<4x16xf32>
    %219 = vector.multi_reduction <maximumf>, %218, %cst_61 [2] : vector<4x16x16xf32> to vector<4x16xf32>
    %220 = vector.shape_cast %219 : vector<4x16xf32> to vector<4x16x1xf32>
    %221 = vector.broadcast %220 : vector<4x16x1xf32> to vector<4x16x16xf32>
    %222 = arith.subf %218, %221 : vector<4x16x16xf32>
    %223 = math.exp %222 : vector<4x16x16xf32>
    %cst_62 = arith.constant dense<0.000000e+00> : vector<4x16xf32>
    %224 = vector.multi_reduction <add>, %223, %cst_62 [2] : vector<4x16x16xf32> to vector<4x16xf32>
    %225 = vector.shape_cast %224 : vector<4x16xf32> to vector<4x16x1xf32>
    %226 = tpu.reciprocal %225 : vector<4x16x1xf32> -> vector<4x16x1xf32>
    %227 = vector.broadcast %226 : vector<4x16x1xf32> to vector<4x16x16xf32>
    %228 = arith.mulf %223, %227 : vector<4x16x16xf32>
    "tpu.trace_start"() <{level = 10 : i32, message = "hqk,hkd->hqd"}> : () -> ()
    %cst_63 = arith.constant dense<0.000000e+00> : vector<4x16x8xf32>
    %229 = tpu.matmul %228, %214, %cst_63 {dimension_numbers = #tpu.dot_dimension_numbers<[2], [1], [1], [2], [0, 0, 0, 1, 1, 2], [0], [0]>} : vector<4x16x16xf32>, vector<4x16x8xf32>, vector<4x16x8xf32> -> vector<4x16x8xf32>
    "tpu.trace_stop"() : () -> ()
    %230 = vector.extract_strided_slice %229 {offsets = [0, 0, 0], sizes = [1, 16, 8], strides = [1, 1, 1]} : vector<4x16x8xf32> to vector<1x16x8xf32>
    %231 = vector.shape_cast %230 : vector<1x16x8xf32> to vector<16x8xf32>
    %232 = vector.extract_strided_slice %229 {offsets = [1, 0, 0], sizes = [1, 16, 8], strides = [1, 1, 1]} : vector<4x16x8xf32> to vector<1x16x8xf32>
    %233 = vector.shape_cast %232 : vector<1x16x8xf32> to vector<16x8xf32>
    %234 = vector.extract_strided_slice %229 {offsets = [2, 0, 0], sizes = [1, 16, 8], strides = [1, 1, 1]} : vector<4x16x8xf32> to vector<1x16x8xf32>
    %235 = vector.shape_cast %234 : vector<1x16x8xf32> to vector<16x8xf32>
    %236 = vector.extract_strided_slice %229 {offsets = [3, 0, 0], sizes = [1, 16, 8], strides = [1, 1, 1]} : vector<4x16x8xf32> to vector<1x16x8xf32>
    %237 = vector.shape_cast %236 : vector<1x16x8xf32> to vector<16x8xf32>
    %238 = tpu.concatenate %231, %233, %235, %237 in 1 : vector<16x8xf32>, vector<16x8xf32>, vector<16x8xf32>, vector<16x8xf32> -> vector<16x32xf32>
    %cst_64 = arith.constant dense<0.000000e+00> : vector<16x32xf32>
    %239 = tpu.matmul %238, %180, %cst_64 {dimension_numbers = #tpu.dot_dimension_numbers<[1], [0], [0], [1], [0, 0, 1, 1], [], []>} : vector<16x32xf32>, vector<32x32xf32>, vector<16x32xf32> -> vector<16x32xf32>
    %c13 = arith.constant 13 : index
    %c0_65 = arith.constant 0 : index
    %240 = vector.load %arg3[%c13, %c0_65] : memref<20x128xf32, #tpu.memory_space<vmem>>, vector<1x32xf32>
    %241 = vector.broadcast %240 : vector<1x32xf32> to vector<16x32xf32>
    %242 = arith.addf %239, %241 : vector<16x32xf32>
    %243 = arith.addf %176, %242 : vector<16x32xf32>
    %c14 = arith.constant 14 : index
    %c0_66 = arith.constant 0 : index
    %244 = vector.load %arg3[%c14, %c0_66] : memref<20x128xf32, #tpu.memory_space<vmem>>, vector<1x32xf32>
    %c15 = arith.constant 15 : index
    %c0_67 = arith.constant 0 : index
    %245 = vector.load %arg3[%c15, %c0_67] : memref<20x128xf32, #tpu.memory_space<vmem>>, vector<1x32xf32>
    %cst_68 = arith.constant dense<0.000000e+00> : vector<16xf32>
    %246 = vector.multi_reduction <add>, %243, %cst_68 [1] : vector<16x32xf32> to vector<16xf32>
    %247 = vector.shape_cast %246 : vector<16xf32> to vector<16x1xf32>
    %cst_69 = arith.constant 3.200000e+01 : f32
    %248 = vector.broadcast %cst_69 : f32 to vector<16x1xf32>
    %249 = arith.divf %247, %248 : vector<16x1xf32>
    %250 = vector.broadcast %249 : vector<16x1xf32> to vector<16x32xf32>
    %251 = arith.subf %243, %250 : vector<16x32xf32>
    %252 = arith.mulf %251, %251 : vector<16x32xf32>
    %cst_70 = arith.constant dense<0.000000e+00> : vector<16xf32>
    %253 = vector.multi_reduction <add>, %252, %cst_70 [1] : vector<16x32xf32> to vector<16xf32>
    %254 = vector.shape_cast %253 : vector<16xf32> to vector<16x1xf32>
    %cst_71 = arith.constant 3.200000e+01 : f32
    %255 = vector.broadcast %cst_71 : f32 to vector<16x1xf32>
    %256 = arith.divf %254, %255 : vector<16x1xf32>
    %257 = vector.broadcast %249 : vector<16x1xf32> to vector<16x32xf32>
    %258 = arith.subf %243, %257 : vector<16x32xf32>
    %cst_72 = arith.constant 9.99999996E-13 : f32
    %259 = vector.broadcast %cst_72 : f32 to vector<16x1xf32>
    %260 = arith.addf %256, %259 : vector<16x1xf32>
    %261 = math.rsqrt %260 : vector<16x1xf32>
    %262 = vector.broadcast %261 : vector<16x1xf32> to vector<16x32xf32>
    %263 = arith.mulf %258, %262 : vector<16x32xf32>
    %264 = vector.broadcast %244 : vector<1x32xf32> to vector<16x32xf32>
    %265 = arith.mulf %263, %264 : vector<16x32xf32>
    %266 = vector.broadcast %245 : vector<1x32xf32> to vector<16x32xf32>
    %267 = arith.addf %265, %266 : vector<16x32xf32>
    %cst_73 = arith.constant dense<0.000000e+00> : vector<16x64xf32>
    %268 = tpu.matmul %267, %181, %cst_73 {dimension_numbers = #tpu.dot_dimension_numbers<[1], [0], [0], [1], [0, 0, 1, 1], [], []>} : vector<16x32xf32>, vector<32x64xf32>, vector<16x64xf32> -> vector<16x64xf32>
    %c16 = arith.constant 16 : index
    %c0_74 = arith.constant 0 : index
    %269 = vector.load %arg3[%c16, %c0_74] : memref<20x128xf32, #tpu.memory_space<vmem>>, vector<1x64xf32>
    %270 = vector.broadcast %269 : vector<1x64xf32> to vector<16x64xf32>
    %271 = arith.addf %268, %270 : vector<16x64xf32>
    %cst_75 = arith.constant 5.000000e-01 : f32
    %272 = vector.broadcast %cst_75 : f32 to vector<16x64xf32>
    %273 = arith.mulf %272, %271 : vector<16x64xf32>
    %cst_76 = arith.constant 4.471500e-02 : f32
    %274 = vector.broadcast %cst_76 : f32 to vector<16x64xf32>
    %275 = arith.mulf %274, %271 : vector<16x64xf32>
    %276 = arith.mulf %275, %271 : vector<16x64xf32>
    %277 = arith.mulf %276, %271 : vector<16x64xf32>
    %278 = arith.addf %271, %277 : vector<16x64xf32>
    %cst_77 = arith.constant 0.797884583 : f32
    %279 = vector.broadcast %cst_77 : f32 to vector<16x64xf32>
    %280 = arith.mulf %279, %278 : vector<16x64xf32>
    %281 = math.tanh %280 : vector<16x64xf32>
    %cst_78 = arith.constant 1.000000e+00 : f32
    %282 = vector.broadcast %cst_78 : f32 to vector<16x64xf32>
    %283 = arith.addf %282, %281 : vector<16x64xf32>
    %284 = arith.mulf %273, %283 : vector<16x64xf32>
    %cst_79 = arith.constant dense<0.000000e+00> : vector<16x32xf32>
    %285 = tpu.matmul %284, %183, %cst_79 {dimension_numbers = #tpu.dot_dimension_numbers<[1], [0], [0], [1], [0, 0, 1, 1], [], []>} : vector<16x64xf32>, vector<64x32xf32>, vector<16x32xf32> -> vector<16x32xf32>
    %c17 = arith.constant 17 : index
    %c0_80 = arith.constant 0 : index
    %286 = vector.load %arg3[%c17, %c0_80] : memref<20x128xf32, #tpu.memory_space<vmem>>, vector<1x32xf32>
    %287 = vector.broadcast %286 : vector<1x32xf32> to vector<16x32xf32>
    %288 = arith.addf %285, %287 : vector<16x32xf32>
    %289 = arith.addf %267, %288 : vector<16x32xf32>
    %c18 = arith.constant 18 : index
    %c0_81 = arith.constant 0 : index
    %290 = vector.load %arg3[%c18, %c0_81] : memref<20x128xf32, #tpu.memory_space<vmem>>, vector<1x32xf32>
    %c19 = arith.constant 19 : index
    %c0_82 = arith.constant 0 : index
    %291 = vector.load %arg3[%c19, %c0_82] : memref<20x128xf32, #tpu.memory_space<vmem>>, vector<1x32xf32>
    %cst_83 = arith.constant dense<0.000000e+00> : vector<16xf32>
    %292 = vector.multi_reduction <add>, %289, %cst_83 [1] : vector<16x32xf32> to vector<16xf32>
    %293 = vector.shape_cast %292 : vector<16xf32> to vector<16x1xf32>
    %cst_84 = arith.constant 3.200000e+01 : f32
    %294 = vector.broadcast %cst_84 : f32 to vector<16x1xf32>
    %295 = arith.divf %293, %294 : vector<16x1xf32>
    %296 = vector.broadcast %295 : vector<16x1xf32> to vector<16x32xf32>
    %297 = arith.subf %289, %296 : vector<16x32xf32>
    %298 = arith.mulf %297, %297 : vector<16x32xf32>
    %cst_85 = arith.constant dense<0.000000e+00> : vector<16xf32>
    %299 = vector.multi_reduction <add>, %298, %cst_85 [1] : vector<16x32xf32> to vector<16xf32>
    %300 = vector.shape_cast %299 : vector<16xf32> to vector<16x1xf32>
    %cst_86 = arith.constant 3.200000e+01 : f32
    %301 = vector.broadcast %cst_86 : f32 to vector<16x1xf32>
    %302 = arith.divf %300, %301 : vector<16x1xf32>
    %303 = vector.broadcast %295 : vector<16x1xf32> to vector<16x32xf32>
    %304 = arith.subf %289, %303 : vector<16x32xf32>
    %cst_87 = arith.constant 9.99999996E-13 : f32
    %305 = vector.broadcast %cst_87 : f32 to vector<16x1xf32>
    %306 = arith.addf %302, %305 : vector<16x1xf32>
    %307 = math.rsqrt %306 : vector<16x1xf32>
    %308 = vector.broadcast %307 : vector<16x1xf32> to vector<16x32xf32>
    %309 = arith.mulf %304, %308 : vector<16x32xf32>
    %310 = vector.broadcast %290 : vector<1x32xf32> to vector<16x32xf32>
    %311 = arith.mulf %309, %310 : vector<16x32xf32>
    %312 = vector.broadcast %291 : vector<1x32xf32> to vector<16x32xf32>
    %313 = arith.addf %311, %312 : vector<16x32xf32>
    %314 = tpu.iota {dimensions = array<i32: 1>} : vector<2x16xi32>
    %315 = tpu.iota {dimensions = array<i32: 0>} : vector<2x16xi32>
    %c8_i32 = arith.constant 8 : i32
    %316 = vector.broadcast %c8_i32 : i32 to vector<2x16xi32>
    %317 = arith.muli %315, %316 : vector<2x16xi32>
    %318 = arith.cmpi eq, %314, %317 : vector<2x16xi32>
    %319 = arith.extui %318 : vector<2x16xi1> to vector<2x16xi32>
    %320 = arith.sitofp %319 : vector<2x16xi32> to vector<2x16xf32>
    %cst_88 = arith.constant dense<0.000000e+00> : vector<2x32xf32>
    %321 = tpu.matmul %320, %313, %cst_88 {dimension_numbers = #tpu.dot_dimension_numbers<[1], [0], [0], [1], [0, 0, 1, 1], [], []>} : vector<2x16xf32>, vector<16x32xf32>, vector<2x32xf32> -> vector<2x32xf32>
    %c0_89 = arith.constant 0 : index
    %c0_90 = arith.constant 0 : index
    %322 = vector.load %arg6[%c0_89, %c0_90] : memref<32x160xf32, #tpu.memory_space<vmem>>, vector<32x128xf32>
    %c0_91 = arith.constant 0 : index
    %c128 = arith.constant 128 : index
    %323 = vector.load %arg6[%c0_91, %c128] : memref<32x160xf32, #tpu.memory_space<vmem>>, vector<32x32xf32>
    %cst_92 = arith.constant dense<0.000000e+00> : vector<2x32xf32>
    %324 = tpu.matmul %321, %323, %cst_92 {dimension_numbers = #tpu.dot_dimension_numbers<[1], [0], [0], [1], [0, 0, 1, 1], [], []>} : vector<2x32xf32>, vector<32x32xf32>, vector<2x32xf32> -> vector<2x32xf32>
    %c2 = arith.constant 2 : index
    %c0_93 = arith.constant 0 : index
    %325 = vector.load %arg3[%c2, %c0_93] : memref<20x128xf32, #tpu.memory_space<vmem>>, vector<1x32xf32>
    %326 = vector.broadcast %325 : vector<1x32xf32> to vector<2x32xf32>
    %327 = arith.addf %324, %326 : vector<2x32xf32>
    %328 = math.tanh %327 : vector<2x32xf32>
    %cst_94 = arith.constant dense<0.000000e+00> : vector<2x128xf32>
    %329 = tpu.matmul %328, %322, %cst_94 {dimension_numbers = #tpu.dot_dimension_numbers<[1], [0], [0], [1], [0, 0, 1, 1], [], []>} : vector<2x32xf32>, vector<32x128xf32>, vector<2x128xf32> -> vector<2x128xf32>
    %c3 = arith.constant 3 : index
    %c0_95 = arith.constant 0 : index
    %330 = vector.load %arg3[%c3, %c0_95] : memref<20x128xf32, #tpu.memory_space<vmem>>, vector<1x128xf32>
    %331 = vector.broadcast %330 : vector<1x128xf32> to vector<2x128xf32>
    %332 = arith.addf %329, %331 : vector<2x128xf32>
    %c0_96 = arith.constant 0 : index
    %c0_97 = arith.constant 0 : index
    %333 = vector.load %arg7[%c0_96, %c0_97] : memref<2x128xf32, #tpu.memory_space<vmem>>, vector<2x128xf32>
    tpu.vector_store %arg7[%c0_96, %c0_97], %332 {strides = array<i32>} : memref<2x128xf32, #tpu.memory_space<vmem>>, vector<2x128xf32>,
    return
  }
}

</mosaic_0001>

<bundles_post_ra>
// kernel: text_classifier_forward.1
= control target key start
LH: loop header
LB: loop body
LE: loop exit
PB: predicated region body
PF: predicated region fallthrough
CT: control target
= control target key end

     0   :  { %v2271_v3 = vmov 0   ;;  %v2272_v8 = vmov 1   ;;  %s3222_s0 = inlined_call_operand.vmem [shape: s32[16,2], index: 0, kind: input, shape index: {}]   ;;  %s3223_s1 = inlined_call_operand.vmem [shape: f32[4,16,16], index: 1, kind: input, shape index: {}]   ;;  %s3224_s2 = inlined_call_operand.vmem [shape: f32[144,32], index: 2, kind: input, shape index: {}]   ;;  %s3225_s3 = inlined_call_operand.vmem [shape: f32[20,128], index: 3, kind: input, shape index: {}]   ;;  %s3226_s4 = inlined_call_operand.vmem [shape: f32[2,32,192], index: 4, kind: input, shape index: {}]   ;;  %s3227_s5 = inlined_call_operand.vmem [shape: f32[2,64,32], index: 5, kind: input, shape index: {}]   ;;  %s3228_s6 = inlined_call_operand.vmem [shape: f32[32,160], index: 6, kind: input, shape index: {}]   ;;  %s3229_s7 = inlined_call_operand.hbm [shape: f32[2,128], index: 7, kind: output, shape index: {}]  }
   0x1   :  { %v28_v0 = vld [vmem:[%s3222_s0 + $0x8] sm:$0xff]  ;;  %v27_v1 = vld [vmem:[%s3222_s0] sm:$0xff]  ;;  %v87_v2 = vld [vmem:[%s3224_s2 + $0x78] sm:$0xff]  ;;  %2059 = vset.pattern.permute.xlu1 %v2271_v3  ;;  %2057 = vset.pattern.permute.xlu0 %v2271_v3 }
   0x2   :  { %36 = vperm.xlu1 %2059, %v28_v0   ;;  %33 = vperm.xlu0 %2057, %v27_v1   ;;  %v86_v4 = vld [vmem:[%s3224_s2 + $0x70] sm:$0xff]  ;;  %v85_v5 = vld [vmem:[%s3224_s2 + $0x68] sm:$0xff]  ;;  %v84_v6 = vld [vmem:[%s3224_s2 + $0x60] sm:$0xff] }
   0x3   :  { %97 = vmatpush.msra.mxu0 %v87_v2  ;;  %v83_v7 = vld [vmem:[%s3224_s2 + $0x58] sm:$0xff] }
   0x5   :  { %98 = vmatpush.msra.mxu0 %v86_v4 }
   0x7   :  { %99 = vmatpush.msra.mxu0 %v85_v5 }
   0x9   :  { %100 = vmatpush.msra.mxu0 %v84_v6 }
   0xa   :  { %2060 = vset.pattern.permute.xlu1 %v2272_v8  ;;  %2058 = vset.pattern.permute.xlu0 %v2272_v8 }
   0xb   :  { %12 = vsyncpa [#allocation3], 0  ;;  %54 = vperm.xlu1 %2060, %v28_v0   ;;  %51 = vperm.xlu0 %2058, %v27_v1   ;;  %v82_v9 = vld [vmem:[%s3224_s2 + $0x50] sm:$0xff]  ;;  %v81_v10 = vld [vmem:[%s3224_s2 + $0x48] sm:$0xff]  ;;  %v29_v22 = vlaneseq  ;;  %vm90_vm4 = vcmask 130048   ;;  %v2273_v28 = vmov 0.0  }
   0xc   :  { %101 = vmatpush.msra.mxu0 %v83_v7  ;;  %v80_v11 = vld [vmem:[%s3224_s2 + $0x40] sm:$0xff]  ;;  %v79_v12 = vld [vmem:[%s3224_s2 + $0x38] sm:$0xff]  ;;  %v78_v13 = vld [vmem:[%s3224_s2 + $0x30] sm:$0xff]  ;;  %vm145_vm9 = vcmask 261120   ;;  %v2274_v50 = vmov 32.0   ;;  %s2275_s29 = smov 112  }
   0xd   :  { %v77_v14 = vld [vmem:[%s3224_s2 + $0x28] sm:$0xff]  ;;  %v76_v15 = vld [vmem:[%s3224_s2 + $0x20] sm:$0xff]  ;;  %v75_v16 = vld [vmem:[%s3224_s2 + $0x18] sm:$0xff]  ;;  %v2386_v23 = vand.u32 127, %v29_v22  ;;  %2141 = vrcp.f32 %v2274_v50  ;;  %s2276_s30 = smov 104   ;;  %s2277_s8 = smov 96  }
   0xe   :  { %102 = vmatpush.msra.mxu0 %v82_v9  ;;  %v74_v17 = vld [vmem:[%s3224_s2 + $0x10] sm:$0xff]  ;;  %v73_v18 = vld [vmem:[%s3224_s2 + $0x8] sm:$0xff]  ;;  %v72_v20 = vld [vmem:[%s3224_s2] sm:$0xff]  ;;  %s2278_s9 = smov 120   ;;  %s2279_s24 = smov 64  }
   0xf   :  { %v89_v19 = vld [vmem:[%s3224_s2 + $0x88] sm:$0xff]  ;;  %v88_v21 = vld [vmem:[%s3224_s2 + $0x80] sm:$0xff]  ;;  %v31_v26 = vadd.s32 128, %v2386_v23  ;;  %v2414_v3 = vld [vmem:[%s3226_s4 + $0x30] sm:$0xff]  ;;  %s2280_s25 = smov 32   ;;  %s2281_s26 = smov 8  }
  0x10   :  { %103 = vmatpush.msra.mxu0 %v81_v10  ;;  %134 = vmatpush.msra.mxu1 %v89_v19  ;;  %v2420_v4 = vld [vmem:[%s3226_s4 + $0x20] sm:$0xff]  ;;  %v2426_v5 = vld [vmem:[%s3226_s4 + $0x10] sm:$0xff]  ;;  %s2282_s27 = smov 16   ;;  %s2283_s28 = smov 24  }
  0x11   :  { %247 = vmatpush.msra.mxu2 %v2414_v3  ;;  %v2432_v6 = vld [vmem:[%s3226_s4] sm:$0xff]  ;;  %v2081_v7 = vpack.i.bf16 %v2420_v4, %v2414_v3 }
  0x12   :  { %104 = vmatpush.msra.mxu0 %v80_v11  ;;  %135 = vmatpush.msra.mxu1 %v88_v21  ;;  %v2086_v8 = vpack.i.bf16 %v2432_v6, %v2426_v5 }
  0x13   :  { %v2142_v51 = vpop.eup %2141  ;;  %248 = vmatpush.msra.mxu2 %v2420_v4 }
  0x14   :  { %105 = vmatpush.msra.mxu0 %v79_v12  ;;  %v153_v52 = vmul.f32 32.0, %v2142_v51  ;;  %vm157_vm10 = vweird.f32 %v2142_v51 }
  0x15   :  { %249 = vmatpush.msra.mxu2 %v2426_v5 }
  0x16   :  { %106 = vmatpush.msra.mxu0 %v78_v13  ;;  %v154_v53 = vsub.f32 1.0, %v153_v52 }
  0x17   :  { %250 = vmatpush.msra.mxu2 %v2432_v6 }
  0x18   :  { %107 = vmatpush.msra.mxu0 %v77_v14  ;;  %v155_v54 = vmul.f32 %v2142_v51, %v154_v53 }
  0x1a   :  { %108 = vmatpush.msra.mxu0 %v76_v15  ;;  %v156_v55 = vadd.f32 %v2142_v51, %v155_v54 }
  0x1c   :  { %109 = vmatpush.msra.mxu0 %v75_v16  ;;  %v2405_v56 = vsel %vm157_vm10, %v2142_v51, %v156_v55 }
  0x1e   :  { %110 = vmatpush.msra.mxu0 %v74_v17 }
  0x20   :  { %111 = vmatpush.msra.mxu0 %v73_v18 }
  0x22   :  { %112 = vmatpush.msra.mxu0 %v72_v20 }
  0x74   :  { %v34_v24 = vpop.permute.xlu0 %33  ;;  %v37_v25 = vpop.permute.xlu1 %36 }
  0x75   :  { %vm38_vm0 = vcmp.eq.s32.totalorder %v2386_v23, %v34_v24  ;;  %vm39_vm1 = vcmp.eq.s32.totalorder %v31_v26, %v34_v24  ;;  %vm40_vm5 = vcmp.eq.s32.totalorder %v2386_v23, %v37_v25  ;;  %vm41_vm6 = vcmp.eq.s32.totalorder %v31_v26, %v37_v25  ;;  %v2121_v25 = vld [vmem:[%s3225_s3] ss:$0 sm:$0xff] }
  0x76   :  { %v1950_v29 = vsel %vm39_vm1, 1.0, %v2273_v28  ;;  %v1949_v32 = vsel %vm38_vm0, 1.0, %v2273_v28  ;;  %v1952_v36 = vsel %vm41_vm6, 1.0, %v2273_v28  ;;  %v1951_v38 = vsel %vm40_vm5, 1.0, %v2273_v28 }
  0x77   :  { %vm276_vm1 = vcmask 64512  }
  0x7d   :  { %v52_v27 = vpop.permute.xlu0 %51  ;;  %v55_v30 = vpop.permute.xlu1 %54 }
  0x7e   :  { %vm56_vm2 = vcmp.eq.s32.totalorder %v2386_v23, %v52_v27  ;;  %vm57_vm3 = vcmp.eq.s32.totalorder %v31_v26, %v52_v27  ;;  %vm58_vm7 = vcmp.eq.s32.totalorder %v2386_v23, %v55_v30  ;;  %vm59_vm8 = vcmp.eq.s32.totalorder %v31_v26, %v55_v30  ;;  %v2122_v30 = vld [vmem:[%s3225_s3 + $0x1] ss:$0 sm:$0xff] }
  0x7f   :  { %v1954_v31 = vsel %vm57_vm3, 1.0, %v2273_v28  ;;  %v1953_v33 = vsel %vm56_vm2, 1.0, %v2273_v28  ;;  %v1956_v37 = vsel %vm59_vm8, 1.0, %v2273_v28  ;;  %v1955_v39 = vsel %vm58_vm7, 1.0, %v2273_v28 }
  0x80   :  { %v69_v34 = vadd.f32 %v1954_v31, %v1950_v29  ;;  %v68_v35 = vadd.f32 %v1953_v33, %v1949_v32  ;;  %v71_v40 = vadd.f32 %v1956_v37, %v1952_v36  ;;  %v70_v41 = vadd.f32 %v1955_v39, %v1951_v38 }
  0x82   :  { %113 = vmatmul.f32.vlgmr.msra.gmra.mxu0 %v68_v35  ;;  %1957 = vmatmul.msk.f32.vlgmr.msra.gmra.mxu1 %vm90_vm4, %v69_v34 }
  0x8a   :  { %116 = vmatmul.f32.gmra.mxu0 %v70_v41  ;;  %1958 = vmatmul.msk.f32.gmra.mxu1 %vm90_vm4, %v71_v40  ;;  %v2123_v40 = vld [vmem:[%s3225_s3 + $0x4] ss:$0 sm:$0xff] }
  0xff   :  { %v114_v42 = vpop.f32.mrf.mxu0  ;;  %v137_v43 = vpop.f32.mrf.mxu1 }
 0x100   :  { %v138_v44 = vadd.f32 %v137_v43, %v114_v42 }
 0x102   :  { %v146_v45 = vsel %vm145_vm9, %v138_v44, 0.0 }
 0x103   :  { %147 = vadd.xlane.f32.xlu2 %v146_v45 }
 0x107   :  { %v117_v46 = vpop.f32.mrf.mxu0  ;;  %v140_v47 = vpop.f32.mrf.mxu1 }
 0x108   :  { %v141_v48 = vadd.f32 %v140_v47, %v117_v46 }
 0x10a   :  { %v149_v49 = vsel %vm145_vm9, %v141_v48, 0.0 }
 0x10b   :  { %150 = vadd.xlane.f32.xlu2 %v149_v49 }
 0x176   :  { %v148_v57 = vpop.xlane.xlu2 %147 }
 0x177   :  { %v159_v58 = vmul.f32 %v2405_v56, %v148_v57 }
 0x179   :  { %v161_v59 = vsub.f32 %v138_v44, %v159_v58 }
 0x17b   :  { %v163_v60 = vmul.f32 %v161_v59, %v161_v59 }
 0x17d   :  { %v165_v61 = vsel %vm145_vm9, %v163_v60, 0.0 }
 0x17e   :  { %166 = vadd.xlane.f32.xlu1 %v165_v61  ;;  %v151_v62 = vpop.xlane.xlu2 %150  ;;  %v205_v61 = vld [vmem:[%s3223_s1 + $0x10] sm:$0xff] }
 0x17f   :  { %v160_v63 = vmul.f32 %v2405_v56, %v151_v62 }
 0x181   :  { %v162_v0 = vsub.f32 %v141_v48, %v160_v63 }
 0x183   :  { %v164_v1 = vmul.f32 %v162_v0, %v162_v0 }
 0x185   :  { %v168_v2 = vsel %vm145_vm9, %v164_v1, 0.0 }
 0x186   :  { %169 = vadd.xlane.f32.xlu2 %v168_v2  ;;  %v206_v2 = vld [vmem:[%s3223_s1 + $0x18] sm:$0xff] }
 0x1f1   :  { %v167_v9 = vpop.xlane.xlu1 %166 }
 0x1f2   :  { %v171_v10 = vmul.f32 %v167_v9, %v2405_v56 }
 0x1f4   :  { %v173_v11 = vadd.f32 1e-12, %v171_v10 }
 0x1f6   :  { %2143 = vrsqrt.f32 %v173_v11  ;;  %vm181_vm12 = vweird.f32 %v173_v11 }
 0x1f9   :  { %v170_v12 = vpop.xlane.xlu2 %169 }
 0x1fa   :  { %v172_v13 = vmul.f32 %v170_v12, %v2405_v56  ;;  %v207_v12 = vld [vmem:[%s3223_s1 + $0x20] sm:$0xff] }
 0x1fc   :  { %v2144_v14 = vpop.eup %2143  ;;  %v174_v15 = vadd.f32 1e-12, %v172_v13 }
 0x1fd   :  { %v176_v16 = vmul.f32 %v2144_v14, %v173_v11  ;;  %vm182_vm11 = vweird.f32 %v2144_v14 }
 0x1fe   :  { %2145 = vrsqrt.f32 %v174_v15  ;;  %vm183_vm13 = vmor %vm181_vm12, %vm182_vm11  ;;  %vm191_vm15 = vweird.f32 %v174_v15 }
 0x1ff   :  { %v177_v17 = vmul.f32 %v2144_v14, %v176_v16 }
 0x201   :  { %v178_v18 = vmul.f32 0.5, %v177_v17 }
 0x203   :  { %v179_v19 = vsub.f32 1.5, %v178_v18  ;;  %v203_v18 = vld [vmem:[%s3223_s1] sm:$0xff] }
 0x204   :  { %v2146_v20 = vpop.eup %2145 }
 0x205   :  { %v180_v21 = vmul.f32 %v2144_v14, %v179_v19  ;;  %v186_v24 = vmul.f32 %v2146_v20, %v174_v15  ;;  %vm192_vm14 = vweird.f32 %v2146_v20 }
 0x206   :  { %vm193_vm0 = vmor %vm191_vm15, %vm192_vm14 }
 0x207   :  { %v184_v26 = vsel %vm183_vm13, %v2144_v14, %v180_v21  ;;  %v187_v27 = vmul.f32 %v2146_v20, %v186_v24  ;;  %v208_v24 = vld [vmem:[%s3223_s1 + $0x28] sm:$0xff] }
 0x208   :  { %v195_v29 = vmul.f32 %v184_v26, %v161_v59 }
 0x209   :  { %v188_v31 = vmul.f32 0.5, %v187_v27 }
 0x20a   :  { %v198_v32 = vmul.f32 %v2121_v25, %v195_v29 }
 0x20b   :  { %v189_v33 = vsub.f32 1.5, %v188_v31 }
 0x20c   :  { %v2447_v34 = vadd.f32 %v2122_v30, %v198_v32  ;;  %v209_v32 = vld [vmem:[%s3223_s1 + $0x30] sm:$0xff] }
 0x20d   :  { %v190_v35 = vmul.f32 %v2146_v20, %v189_v33 }
 0x20e   :  { %1959 = vmatmul.msk.f32.vlgmr.msra.gmra.mxu2 %vm145_vm9, %v2447_v34 }
 0x20f   :  { %v194_v36 = vsel %vm193_vm0, %v2146_v20, %v190_v35 }
 0x210   :  { %v196_v37 = vmul.f32 %v194_v36, %v162_v0 }
 0x212   :  { %v199_v38 = vmul.f32 %v2121_v25, %v196_v37 }
 0x214   :  { %v2451_v39 = vadd.f32 %v2122_v30, %v199_v38  ;;  %v210_v38 = vld [vmem:[%s3223_s1 + $0x38] sm:$0xff] }
 0x216   :  { %1960 = vmatmul.msk.f32.gmra.mxu2 %vm145_vm9, %v2451_v39 }
 0x291   :  { %v252_v41 = vpop.f32.mrf.mxu2 }
 0x292   :  { %v2458_v42 = vadd.f32 %v2123_v40, %v252_v41 }
 0x294   :  { %264 = vrot.lane.b32.xlu2 %v2458_v42, %s2275_s29 }
 0x299   :  { %v255_v43 = vpop.f32.mrf.mxu2 }
 0x29a   :  { %v2462_v44 = vadd.f32 %v2123_v40, %v255_v43 }
 0x29c   :  { %268 = vrot.lane.b32.xlu2 %v2458_v42, %s2276_s30  ;;  %266 = vrot.lane.b32.xlu0 %v2462_v44, %s2275_s29 }
 0x2a4   :  { %272 = vrot.lane.b32.xlu2 %v2458_v42, %s2277_s8  ;;  %262 = vrot.lane.b32.xlu0 %v2462_v44, %s2278_s9 }
 0x2ac   :  { %270 = vrot.lane.b32.xlu0 %v2462_v44, %s2276_s30 }
 0x2b4   :  { %260 = vrot.lane.b32.xlu0 %v2458_v42, %s2278_s9 }
 0x2bc   :  { %274 = vrot.lane.b32.xlu0 %v2462_v44, %s2277_s8 }
 0x2ee   :  { %v2478_v45 = vpop.permute.xlu2 %264 }
 0x2ef   :  { %343 = vrot.lane.b32.xlu0 %v2478_v45, %s2277_s8 }
 0x2f6   :  { %v2494_v49 = vpop.permute.xlu2 %268 }
 0x2fe   :  { %v273_v52 = vpop.permute.xlu2 %272 }
 0x30e   :  { %v2482_v46 = vpop.permute.xlu0 %266 }
 0x30f   :  { %345 = vrot.lane.b32.xlu1 %v2482_v46, %s2277_s8 }
 0x316   :  { %v2486_v47 = vpop.permute.xlu0 %262 }
 0x317   :  { %310 = vrot.lane.b32.xlu2 %v2486_v47, %s2277_s8 }
 0x31e   :  { %v2490_v48 = vpop.permute.xlu0 %270 }
 0x31f   :  { %380 = vrot.lane.b32.xlu0 %v2490_v48, %s2277_s8 }
 0x326   :  { %v2496_v50 = vpop.permute.xlu0 %260 }
 0x327   :  { %308 = vrot.lane.b32.xlu2 %v2496_v50, %s2277_s8  ;;  %378 = vrot.lane.b32.xlu0 %v2494_v49, %s2277_s8 }
 0x32e   :  { %v275_v51 = vpop.permute.xlu0 %274 }
 0x32f   :  { %1961 = vmatpush.xpose.msk.msra.mxu3 %vm276_vm1, %v275_v51 }
 0x333   :  { %1962 = vmatpush.xpose.msk.msra.mxu3 %vm276_vm1, %v273_v52  ;;  %v204_v52 = vld [vmem:[%s3223_s1 + $0x8] sm:$0xff] }
 0x336   :  { %1963 = vmatmul.msk.f32.vlgmr.msra.gmra.mxu3 %vm276_vm1, %v2458_v42 }
 0x33e   :  { %1964 = vmatmul.msk.f32.gmra.mxu3 %vm276_vm1, %v2462_v44 }
 0x361   :  { %v344_v57 = vpop.permute.xlu0 %343 }
 0x371   :  { %v311_v53 = vpop.permute.xlu2 %310 }
 0x372   :  { %1965 = vmatpush.xpose.msk.msrb.mxu1 %vm276_vm1, %v311_v53 }
 0x381   :  { %v346_v54 = vpop.permute.xlu1 %345  ;;  %v309_v55 = vpop.permute.xlu2 %308 }
 0x382   :  { %1966 = vmatpush.xpose.msk.msrb.mxu1 %vm276_vm1, %v309_v55  ;;  %1969 = vmatpush.xpose.msk.msrb.mxu2 %vm276_vm1, %v346_v54 }
 0x385   :  { %1967 = vmatmul.msk.f32.vlgmr.msrb.gmra.mxu1 %vm276_vm1, %v2496_v50 }
 0x386   :  { %1970 = vmatpush.xpose.msk.msrb.mxu2 %vm276_vm1, %v344_v57 }
 0x389   :  { %1971 = vmatmul.msk.f32.vlgmr.msrb.gmra.mxu2 %vm276_vm1, %v2478_v45 }
 0x38d   :  { %1968 = vmatmul.msk.f32.gmra.mxu1 %vm276_vm1, %v2486_v47 }
 0x391   :  { %1972 = vmatmul.msk.f32.gmra.mxu2 %vm276_vm1, %v2482_v46  ;;  %v381_v58 = vpop.permute.xlu0 %380 }
 0x392   :  { %1973 = vmatpush.xpose.msk.msrb.mxu3 %vm276_vm1, %v381_v58 }
 0x399   :  { %v379_v59 = vpop.permute.xlu0 %378 }
 0x39a   :  { %1974 = vmatpush.xpose.msk.msrb.mxu3 %vm276_vm1, %v379_v59 }
 0x39d   :  { %1975 = vmatmul.msk.f32.vlgmr.msrb.gmra.mxu3 %vm276_vm1, %v2494_v49 }
 0x3a5   :  { %1976 = vmatmul.msk.f32.gmra.mxu3 %vm276_vm1, %v2490_v48 }
 0x3b9   :  { %v302_v10 = vpop.f32.mrf.mxu3 }
 0x3ba   :  { %v413_v15 = vmul.f32 0.35355338, %v302_v10 }
 0x3bc   :  { %v2541_v20 = vadd.f32 %v413_v15, %v203_v18 }
 0x3be   :  { %v429_v26 = vsel %vm90_vm4, %v2541_v20, -inf }
 0x3c1   :  { %v305_v29 = vpop.f32.mrf.mxu3 }
 0x3c2   :  { %v414_v43 = vmul.f32 0.35355338, %v305_v29 }
 0x3c4   :  { %v2560_v53 = vadd.f32 %v414_v43, %v204_v52 }
 0x3c6   :  { %v432_v54 = vsel %vm90_vm4, %v2560_v53, -inf }
 0x402   :  { %v337_v60 = vpop.f32.mrf.mxu1 }
 0x403   :  { %v415_v62 = vmul.f32 0.35355338, %v337_v60 }
 0x405   :  { %v423_v63 = vadd.f32 %v415_v62, %v205_v61 }
 0x407   :  { %v435_v0 = vsel %vm90_vm4, %v423_v63, -inf }
 0x408   :  { %436 = vmax.xlane.f32.xlu2 %v435_v0 }
 0x40a   :  { %v340_v1 = vpop.f32.mrf.mxu1 }
 0x40b   :  { %v416_v9 = vmul.f32 0.35355338, %v340_v1 }
 0x40c   :  { %v372_v11 = vpop.f32.mrf.mxu2 }
 0x40d   :  { %v417_v13 = vmul.f32 0.35355338, %v372_v11  ;;  %v424_v14 = vadd.f32 %v416_v9, %v206_v2 }
 0x40f   :  { %v438_v16 = vsel %vm90_vm4, %v424_v14, -inf  ;;  %v425_v17 = vadd.f32 %v417_v13, %v207_v12 }
 0x410   :  { %439 = vmax.xlane.f32.xlu0 %v438_v16 }
 0x411   :  { %v441_v19 = vsel %vm90_vm4, %v425_v17, -inf }
 0x412   :  { %442 = vmax.xlane.f32.xlu1 %v441_v19 }
 0x414   :  { %v375_v21 = vpop.f32.mrf.mxu2 }
 0x415   :  { %v418_v25 = vmul.f32 0.35355338, %v375_v21 }
 0x417   :  { %v426_v27 = vadd.f32 %v418_v25, %v208_v24 }
 0x418   :  { %430 = vmax.xlane.f32.xlu0 %v429_v26 }
 0x419   :  { %v444_v30 = vsel %vm90_vm4, %v426_v27, -inf }
 0x41a   :  { %445 = vmax.xlane.f32.xlu1 %v444_v30 }
 0x420   :  { %v407_v31 = vpop.f32.mrf.mxu3 }
 0x421   :  { %v419_v33 = vmul.f32 0.35355338, %v407_v31  ;;  %v2066_v31 = vpack.i.bf16 %v2478_v45, %v2496_v50  ;;  %v2076_v50 = vpack.i.bf16 %v2458_v42, %v2462_v44 }
 0x423   :  { %v427_v35 = vadd.f32 %v419_v33, %v209_v32  ;;  %v2061_v33 = vpack.i.bf16 %v2482_v46, %v2486_v47 }
 0x425   :  { %v447_v36 = vsel %vm90_vm4, %v427_v35, -inf }
 0x426   :  { %448 = vmax.xlane.f32.xlu2 %v447_v36  ;;  %v2071_v36 = vpack.i.bf16 %v2494_v49, %v2490_v48 }
 0x428   :  { %v410_v37 = vpop.f32.mrf.mxu3 }
 0x429   :  { %v420_v40 = vmul.f32 0.35355338, %v410_v37 }
 0x42b   :  { %v428_v41 = vadd.f32 %v420_v40, %v210_v38 }
 0x42d   :  { %v450_v51 = vsel %vm90_vm4, %v428_v41, -inf }
 0x42e   :  { %451 = vmax.xlane.f32.xlu2 %v450_v51 }
 0x436   :  { %433 = vmax.xlane.f32.xlu2 %v432_v54 }
 0x47b   :  { %v437_v55 = vpop.xlane.xlu2 %436 }
 0x47c   :  { %v455_v57 = vsub.f32 %v423_v63, %v437_v55 }
 0x47e   :  { %v465_v58 = vmul.f32 1.442695, %v455_v57 }
 0x480   :  { %2147 = vpow2.f32 %v465_v58 }
 0x483   :  { %v440_v59 = vpop.xlane.xlu0 %439 }
 0x484   :  { %v456_v60 = vsub.f32 %v424_v14, %v440_v59 }
 0x485   :  { %v443_v61 = vpop.xlane.xlu1 %442 }
 0x486   :  { %v2564_v62 = vpop.eup %2147  ;;  %v467_v0 = vmul.f32 1.442695, %v456_v60  ;;  %v457_v1 = vsub.f32 %v425_v17, %v443_v61 }
 0x487   :  { %v483_v2 = vsel %vm90_vm4, %v2564_v62, 0.0 }
 0x488   :  { %2149 = vpow2.f32 %v467_v0  ;;  %v469_v9 = vmul.f32 1.442695, %v457_v1  ;;  %484 = vadd.xlane.f32.xlu1 %v483_v2 }
 0x48a   :  { %2151 = vpow2.f32 %v469_v9 }
 0x48d   :  { %v446_v10 = vpop.xlane.xlu1 %445 }
 0x48e   :  { %v2568_v11 = vpop.eup %2149  ;;  %v458_v63 = vsub.f32 %v426_v27, %v446_v10 }
 0x48f   :  { %v486_v12 = vsel %vm90_vm4, %v2568_v11, 0.0 }
 0x490   :  { %v2572_v13 = vpop.eup %2151  ;;  %v471_v14 = vmul.f32 1.442695, %v458_v63  ;;  %487 = vadd.xlane.f32.xlu1 %v486_v12 }
 0x491   :  { %v489_v15 = vsel %vm90_vm4, %v2572_v13, 0.0 }
 0x492   :  { %2153 = vpow2.f32 %v471_v14  ;;  %490 = vadd.xlane.f32.xlu0 %v489_v15 }
 0x498   :  { %v2576_v16 = vpop.eup %2153 }
 0x499   :  { %v449_v17 = vpop.xlane.xlu2 %448  ;;  %v492_v18 = vsel %vm90_vm4, %v2576_v16, 0.0 }
 0x49a   :  { %v459_v19 = vsub.f32 %v427_v35, %v449_v17  ;;  %493 = vadd.xlane.f32.xlu0 %v492_v18  ;;  %v431_v35 = vpop.xlane.xlu0 %430 }
 0x49b   :  { %v453_v37 = vsub.f32 %v2541_v20, %v431_v35 }
 0x49c   :  { %v473_v21 = vmul.f32 1.442695, %v459_v19 }
 0x49d   :  { %v461_v45 = vmul.f32 1.442695, %v453_v37 }
 0x49e   :  { %2155 = vpow2.f32 %v473_v21 }
 0x4a1   :  { %v452_v24 = vpop.xlane.xlu2 %451 }
 0x4a2   :  { %v460_v25 = vsub.f32 %v428_v41, %v452_v24 }
 0x4a4   :  { %v2580_v26 = vpop.eup %2155  ;;  %v475_v27 = vmul.f32 1.442695, %v460_v25 }
 0x4a5   :  { %v495_v29 = vsel %vm90_vm4, %v2580_v26, 0.0 }
 0x4a6   :  { %2157 = vpow2.f32 %v475_v27  ;;  %496 = vadd.xlane.f32.xlu2 %v495_v29 }
 0x4a7   :  { %2159 = vpow2.f32 %v461_v45 }
 0x4a9   :  { %v434_v38 = vpop.xlane.xlu2 %433 }
 0x4aa   :  { %v454_v46 = vsub.f32 %v2560_v53, %v434_v38 }
 0x4ac   :  { %v2584_v30 = vpop.eup %2157  ;;  %v463_v48 = vmul.f32 1.442695, %v454_v46 }
 0x4ad   :  { %v498_v32 = vsel %vm90_vm4, %v2584_v30, 0.0  ;;  %v2601_v40 = vpop.eup %2159 }
 0x4ae   :  { %2067 = vrot.lane.b32.xlu0 %v2066_v31, %s2279_s24  ;;  %499 = vadd.xlane.f32.xlu1 %v498_v32  ;;  %v477_v47 = vsel %vm90_vm4, %v2601_v40, 0.0  ;;  %2161 = vpow2.f32 %v463_v48 }
 0x4b4   :  { %v2606_v49 = vpop.eup %2161 }
 0x4b5   :  { %v480_v20 = vsel %vm90_vm4, %v2606_v49, 0.0 }
 0x4be   :  { %2062 = vrot.lane.b32.xlu2 %v2061_v33, %s2279_s24 }
 0x4c7   :  { %2072 = vrot.lane.b32.xlu1 %v2071_v36, %s2279_s24 }
 0x4cf   :  { %2077 = vrot.lane.b32.xlu1 %v2076_v50, %s2279_s24 }
 0x4d7   :  { %2082 = vrot.lane.b32.xlu1 %v2081_v7, %s2280_s25 }
 0x4d8   :  { %478 = vadd.xlane.f32.xlu0 %v477_v47 }
 0x4df   :  { %2087 = vrot.lane.b32.xlu1 %v2086_v8, %s2280_s25 }
 0x4e7   :  { %481 = vadd.xlane.f32.xlu2 %v480_v20 }
 0x4fb   :  { %v485_v42 = vpop.xlane.xlu1 %484 }
 0x4fc   :  { %2163 = vrcp.f32 %v485_v42  ;;  %vm534_vm5 = vweird.f32 %v485_v42  ;;  %v540_v1 = vand.u32 2147483648, %v485_v42  ;;  %v538_v10 = vand.u32 2147483647, %v485_v42 }
 0x4fe   :  { %v541_v19 = vor.u32 1.1754944e-38, %v540_v1  ;;  %vm539_vm10 = vcmp.eq.f32.partialorder %v538_v10, 8.507059e+37 }
 0x502   :  { %v2164_v43 = vpop.eup %2163 }
 0x503   :  { %v2618_v41 = vpop.xlane.xlu1 %487  ;;  %v530_v53 = vmul.f32 %v2164_v43, %v485_v42  ;;  %vm535_vm2 = vweird.f32 %v2164_v43 }
 0x504   :  { %vm2634_vm6 = vmor %vm534_vm5, %vm535_vm2  ;;  %vm548_vm11 = vweird.f32 %v2618_v41  ;;  %v554_v33 = vand.u32 2147483648, %v2618_v41  ;;  %v552_v47 = vand.u32 2147483647, %v2618_v41 }
 0x505   :  { %v491_v44 = vpop.xlane.xlu0 %490  ;;  %v531_v4 = vsub.f32 1.0, %v530_v53 }
 0x506   :  { %2165 = vrcp.f32 %v491_v44  ;;  %v568_v2 = vand.u32 2147483648, %v491_v44  ;;  %vm562_vm7 = vweird.f32 %v491_v44  ;;  %v566_v63 = vand.u32 2147483647, %v491_v44 }
 0x507   :  { %2167 = vrcp.f32 %v2618_v41  ;;  %v532_v8 = vmul.f32 %v2164_v43, %v531_v4 }
 0x508   :  { %v569_v21 = vor.u32 1.1754944e-38, %v568_v2  ;;  %vm567_vm12 = vcmp.eq.f32.partialorder %v566_v63, 8.507059e+37 }
 0x509   :  { %v533_v59 = vadd.f32 %v2164_v43, %v532_v8 }
 0x50b   :  { %v537_v14 = vsel %vm2634_vm6, %v2164_v43, %v533_v59  ;;  %v555_v43 = vor.u32 1.1754944e-38, %v554_v33 }
 0x50c   :  { %v2166_v51 = vpop.eup %2165  ;;  %v542_v27 = vsel %vm539_vm10, %v541_v19, %v537_v14 }
 0x50d   :  { %v2621_v52 = vpop.xlane.xlu0 %493  ;;  %v558_v3 = vmul.f32 %v2166_v51, %v491_v44  ;;  %v2624_v7 = vpop.eup %2167  ;;  %vm563_vm3 = vweird.f32 %v2166_v51  ;;  %v615_v48 = vmul.f32 %v2564_v62, %v542_v27 }
 0x50e   :  { %2169 = vrcp.f32 %v2621_v52  ;;  %v544_v54 = vmul.f32 %v2624_v7, %v2618_v41  ;;  %vm2638_vm8 = vmor %vm562_vm7, %vm563_vm3  ;;  %vm549_vm13 = vweird.f32 %v2624_v7  ;;  %v582_v50 = vand.u32 2147483648, %v2621_v52 }
 0x50f   :  { %v559_v5 = vsub.f32 1.0, %v558_v3  ;;  %vm576_vm15 = vweird.f32 %v2621_v52  ;;  %vm2666_vm0 = vmor %vm548_vm11, %vm549_vm13  ;;  %v580_v44 = vand.u32 2147483647, %v2621_v52  ;;  %vm553_vm3 = vcmp.eq.f32.partialorder %v552_v47, 8.507059e+37 }
 0x510   :  { %v545_v60 = vsub.f32 1.0, %v544_v54 }
 0x511   :  { %v560_v55 = vmul.f32 %v2166_v51, %v559_v5  ;;  %vm581_vm5 = vcmp.eq.f32.partialorder %v580_v44, 8.507059e+37 }
 0x512   :  { %v546_v15 = vmul.f32 %v2624_v7, %v545_v60 }
 0x513   :  { %v561_v61 = vadd.f32 %v2166_v51, %v560_v55 }
 0x514   :  { %v2626_v6 = vpop.eup %2169  ;;  %v547_v36 = vadd.f32 %v2624_v7, %v546_v15 }
 0x515   :  { %v572_v57 = vmul.f32 %v2626_v6, %v2621_v52  ;;  %v565_v17 = vsel %vm2638_vm8, %v2166_v51, %v561_v61  ;;  %vm577_vm14 = vweird.f32 %v2626_v6  ;;  %v583_v51 = vor.u32 1.1754944e-38, %v582_v50 }
 0x516   :  { %v570_v29 = vsel %vm567_vm12, %v569_v21, %v565_v17  ;;  %vm578_vm2 = vmor %vm576_vm15, %vm577_vm14 }
 0x517   :  { %v573_v0 = vsub.f32 1.0, %v572_v57  ;;  %v617_v20 = vmul.f32 %v2572_v13, %v570_v29  ;;  %v551_v13 = vsel %vm2666_vm0, %v2624_v7, %v547_v36 }
 0x518   :  { %v556_v52 = vsel %vm553_vm3, %v555_v43, %v551_v13 }
 0x519   :  { %v2632_v58 = vpop.xlane.xlu2 %496  ;;  %v574_v18 = vmul.f32 %v2626_v6, %v573_v0  ;;  %v616_v5 = vmul.f32 %v2568_v11, %v556_v52 }
 0x51a   :  { %2171 = vrcp.f32 %v2632_v58  ;;  %v596_v57 = vand.u32 2147483648, %v2632_v58  ;;  %vm590_vm7 = vweird.f32 %v2632_v58  ;;  %v594_v59 = vand.u32 2147483647, %v2632_v58 }
 0x51b   :  { %v575_v37 = vadd.f32 %v2626_v6, %v574_v18 }
 0x51c   :  { %vm595_vm10 = vcmp.eq.f32.partialorder %v594_v59, 8.507059e+37 }
 0x51d   :  { %v579_v41 = vsel %vm578_vm2, %v2626_v6, %v575_v37 }
 0x51e   :  { %v584_v53 = vsel %vm581_vm5, %v583_v51, %v579_v41 }
 0x51f   :  { %v618_v8 = vmul.f32 %v2576_v16, %v584_v53  ;;  %v597_v16 = vor.u32 1.1754944e-38, %v596_v57 }
 0x520   :  { %v2068_v24 = vpop.permute.xlu0 %2067  ;;  %v2172_v45 = vpop.eup %2171 }
 0x521   :  { %v2063_v25 = vpop.permute.xlu2 %2062  ;;  %v2652_v35 = vpop.xlane.xlu1 %499  ;;  %v2070_v38 = vunpack.i.h.bf16 %v2068_v24  ;;  %v2069_v46 = vunpack.i.l.bf16 %v2068_v24  ;;  %v586_v62 = vmul.f32 %v2172_v45, %v2632_v58  ;;  %vm591_vm6 = vweird.f32 %v2172_v45 }
 0x522   :  { %v2065_v31 = vunpack.i.h.bf16 %v2063_v25  ;;  %v2064_v32 = vunpack.i.l.bf16 %v2063_v25  ;;  %2173 = vrcp.f32 %v2652_v35  ;;  %vm592_vm8 = vmor %vm590_vm7, %vm591_vm6  ;;  %v610_v9 = vand.u32 2147483648, %v2652_v35 }
 0x523   :  { %v587_v3 = vsub.f32 1.0, %v586_v62  ;;  %vm604_vm12 = vweird.f32 %v2652_v35  ;;  %v608_v58 = vand.u32 2147483647, %v2652_v35 }
 0x524   :  { %682 = vmatpush.msra.mxu2 %v2064_v32  ;;  %717 = vmatpush.msra.mxu3 %v2065_v31  ;;  %v611_v14 = vor.u32 1.1754944e-38, %v610_v9 }
 0x525   :  { %v588_v54 = vmul.f32 %v2172_v45, %v587_v3  ;;  %vm609_vm14 = vcmp.eq.f32.partialorder %v608_v58, 8.507059e+37  ;;  %v2124_v58 = vld [vmem:[%s3225_s3 + $0x5] ss:$0 sm:$0xff] }
 0x526   :  { %683 = vmatpush.msra.mxu2 %v2069_v46  ;;  %718 = vmatpush.msra.mxu3 %v2070_v38 }
 0x527   :  { %1979 = vmatmul.msk.f32.vlgmr.msra.gmra.mxu2 %vm90_vm4, %v615_v48  ;;  %1981 = vmatmul.msk.f32.vlgmr.msra.gmra.mxu3 %vm90_vm4, %v617_v20  ;;  %v589_v7 = vadd.f32 %v2172_v45, %v588_v54 }
 0x528   :  { %v2174_v4 = vpop.eup %2173 }
 0x529   :  { %v600_v55 = vmul.f32 %v2174_v4, %v2652_v35  ;;  %v593_v60 = vsel %vm592_vm8, %v2172_v45, %v589_v7  ;;  %vm605_vm11 = vweird.f32 %v2174_v4 }
 0x52a   :  { %v598_v1 = vsel %vm595_vm10, %v597_v16, %v593_v60  ;;  %vm606_vm13 = vmor %vm604_vm12, %vm605_vm11  ;;  %vm789_vm10 = vcmask 195584  }
 0x52b   :  { %v601_v6 = vsub.f32 1.0, %v600_v55  ;;  %v619_v63 = vmul.f32 %v2580_v26, %v598_v1 }
 0x52d   :  { %v602_v11 = vmul.f32 %v2174_v4, %v601_v6 }
 0x52f   :  { %1980 = vmatmul.msk.f32.gmra.mxu2 %vm90_vm4, %v616_v5  ;;  %1982 = vmatmul.msk.f32.gmra.mxu3 %vm90_vm4, %v618_v8  ;;  %v603_v2 = vadd.f32 %v2174_v4, %v602_v11 }
 0x531   :  { %v607_v12 = vsel %vm606_vm13, %v2174_v4, %v603_v2 }
 0x532   :  { %v612_v18 = vsel %vm609_vm14, %v611_v14, %v607_v12 }
 0x533   :  { %v620_v21 = vmul.f32 %v2584_v30, %v612_v18 }
 0x539   :  { %v2073_v61 = vpop.permute.xlu1 %2072 }
 0x53a   :  { %v2074_v0 = vunpack.i.l.bf16 %v2073_v61  ;;  %v2075_v10 = vunpack.i.h.bf16 %v2073_v61 }
 0x53c   :  { %752 = vmatpush.msrb.mxu0 %v2074_v0 }
 0x53e   :  { %753 = vmatpush.msrb.mxu0 %v2075_v10 }
 0x53f   :  { %1983 = vmatmul.msk.f32.vlgmr.msrb.gmra.mxu0 %vm90_vm4, %v619_v63 }
 0x541   :  { %v2078_v15 = vpop.permute.xlu1 %2077 }
 0x542   :  { %v2079_v17 = vunpack.i.l.bf16 %v2078_v15  ;;  %v2080_v19 = vunpack.i.h.bf16 %v2078_v15 }
 0x544   :  { %647 = vmatpush.msra.mxu1 %v2079_v17 }
 0x546   :  { %648 = vmatpush.msra.mxu1 %v2080_v19 }
 0x547   :  { %1984 = vmatmul.msk.f32.gmra.mxu0 %vm90_vm4, %v620_v21 }
 0x549   :  { %v2083_v3 = vpop.permute.xlu1 %2082 }
 0x54a   :  { %v2085_v4 = vunpack.i.h.bf16 %v2083_v3  ;;  %v2084_v5 = vunpack.i.l.bf16 %v2083_v3 }
 0x54b   :  { %v479_v26 = vpop.xlane.xlu0 %478 }
 0x54c   :  { %2175 = vrcp.f32 %v479_v26  ;;  %v512_v29 = vand.u32 2147483648, %v479_v26  ;;  %v510_v32 = vand.u32 2147483647, %v479_v26  ;;  %vm506_vm0 = vweird.f32 %v479_v26  ;;  %828 = vmatpush.msrb.mxu1 %v2084_v5 }
 0x54e   :  { %v513_v35 = vor.u32 1.1754944e-38, %v512_v29  ;;  %vm511_vm3 = vcmp.eq.f32.partialorder %v510_v32, 8.507059e+37  ;;  %829 = vmatpush.msrb.mxu1 %v2085_v4  ;;  %v2126_v4 = vld [vmem:[%s3225_s3 + $0x7] ss:$0 sm:$0xff] }
 0x551   :  { %v2088_v8 = vpop.permute.xlu1 %2087 }
 0x552   :  { %v2176_v24 = vpop.eup %2175  ;;  %v2090_v54 = vunpack.i.h.bf16 %v2088_v8  ;;  %v2089_v55 = vunpack.i.l.bf16 %v2088_v8 }
 0x553   :  { %v502_v25 = vmul.f32 %v2176_v24, %v479_v26  ;;  %vm507_vm15 = vweird.f32 %v2176_v24 }
 0x554   :  { %vm508_vm2 = vmor %vm506_vm0, %vm507_vm15  ;;  %830 = vmatpush.msrb.mxu1 %v2089_v55 }
 0x555   :  { %v503_v27 = vsub.f32 1.0, %v502_v25 }
 0x556   :  { %831 = vmatpush.msrb.mxu1 %v2090_v54 }
 0x557   :  { %v504_v31 = vmul.f32 %v2176_v24, %v503_v27 }
 0x559   :  { %v505_v33 = vadd.f32 %v2176_v24, %v504_v31 }
 0x55a   :  { %v482_v36 = vpop.xlane.xlu2 %481 }
 0x55b   :  { %v509_v37 = vsel %vm508_vm2, %v2176_v24, %v505_v33  ;;  %2177 = vrcp.f32 %v482_v36  ;;  %v526_v47 = vand.u32 2147483648, %v482_v36  ;;  %v524_v20 = vand.u32 2147483647, %v482_v36 }
 0x55c   :  { %v514_v30 = vsel %vm511_vm3, %v513_v35, %v509_v37  ;;  %vm520_vm6 = vweird.f32 %v482_v36  ;;  %v216_v37 = vld [vmem:[%s3226_s4 + $0x28] sm:$0xff]  ;;  %vm944_vm2 = vcmask 523264  }
 0x55d   :  { %v613_v45 = vmul.f32 %v2601_v40, %v514_v30  ;;  %v527_v44 = vor.u32 1.1754944e-38, %v526_v47  ;;  %vm525_vm8 = vcmp.eq.f32.partialorder %v524_v20, 8.507059e+37  ;;  %v214_v30 = vld [vmem:[%s3226_s4 + $0x18] sm:$0xff] }
 0x55f   :  { %1977 = vmatmul.msk.f32.vlgmr.msra.gmra.mxu1 %vm90_vm4, %v613_v45  ;;  %v212_v45 = vld [vmem:[%s3226_s4 + $0x8] sm:$0xff] }
 0x561   :  { %v2178_v50 = vpop.eup %2177 }
 0x562   :  { %v516_v38 = vmul.f32 %v2178_v50, %v482_v36  ;;  %vm521_vm5 = vweird.f32 %v2178_v50 }
 0x563   :  { %vm522_vm7 = vmor %vm520_vm6, %vm521_vm5 }
 0x564   :  { %v517_v46 = vsub.f32 1.0, %v516_v38 }
 0x566   :  { %v518_v48 = vmul.f32 %v2178_v50, %v517_v46 }
 0x568   :  { %v519_v42 = vadd.f32 %v2178_v50, %v518_v48 }
 0x56a   :  { %v523_v62 = vsel %vm522_vm7, %v2178_v50, %v519_v42 }
 0x56b   :  { %v528_v13 = vsel %vm525_vm8, %v527_v44, %v523_v62 }
 0x56c   :  { %v614_v41 = vmul.f32 %v2606_v49, %v528_v13 }
 0x56e   :  { %1978 = vmatmul.msk.f32.gmra.mxu1 %vm90_vm4, %v614_v41 }
 0x5aa   :  { %v685_v40 = vpop.f32.mrf.mxu2  ;;  %v720_v43 = vpop.f32.mrf.mxu3 }
 0x5ab   :  { %763 = vrot.lane.b32.xlu1 %v685_v40, %s2281_s26 }
 0x5b2   :  { %v688_v51 = vpop.f32.mrf.mxu2  ;;  %v723_v52 = vpop.f32.mrf.mxu3 }
 0x5b3   :  { %771 = vrot.lane.b32.xlu1 %v720_v43, %s2282_s27  ;;  %765 = vrot.lane.b32.xlu2 %v688_v51, %s2281_s26 }
 0x5bb   :  { %773 = vrot.lane.b32.xlu1 %v723_v52, %s2282_s27  ;;  %v2125_v52 = vld [vmem:[%s3225_s3 + $0x6] ss:$0 sm:$0xff] }
 0x5bc   :  { %v755_v53 = vpop.f32.mrf.mxu0 }
 0x5bd   :  { %779 = vrot.lane.b32.xlu0 %v755_v53, %s2283_s28 }
 0x5c4   :  { %v758_v49 = vpop.f32.mrf.mxu0 }
 0x5c5   :  { %781 = vrot.lane.b32.xlu1 %v758_v49, %s2283_s28 }
 0x5dc   :  { %v650_v57 = vpop.f32.mrf.mxu1 }
 0x5eb   :  { %v653_v1 = vpop.f32.mrf.mxu1 }
 0x60d   :  { %v766_v0 = vpop.permute.xlu2 %765 }
 0x60e   :  { %v786_v2 = vsel %vm276_vm1, %v653_v1, %v766_v0  ;;  %v223_v0 = vld [vmem:[%s3227_s5 + $0x20] sm:$0xff]  ;;  %v222_v1 = vld [vmem:[%s3227_s5 + $0x18] sm:$0xff] }
 0x61d   :  { %v764_v7 = vpop.permute.xlu1 %763 }
 0x61e   :  { %v785_v59 = vsel %vm276_vm1, %v650_v57, %v764_v7 }
 0x625   :  { %v772_v6 = vpop.permute.xlu1 %771 }
 0x626   :  { %v787_v11 = vsel %vm90_vm4, %v785_v59, %v772_v6 }
 0x62d   :  { %v774_v60 = vpop.permute.xlu1 %773 }
 0x62e   :  { %v788_v9 = vsel %vm90_vm4, %v786_v2, %v774_v60  ;;  %v226_v60 = vld [vmem:[%s3227_s5 + $0x38] sm:$0xff]  ;;  %v221_v2 = vld [vmem:[%s3227_s5 + $0x10] sm:$0xff] }
 0x62f   :  { %v780_v16 = vpop.permute.xlu0 %779  ;;  %959 = vmatpush.msrb.mxu3 %v226_v60 }
 0x630   :  { %v790_v61 = vsel %vm789_vm10, %v787_v11, %v780_v16  ;;  %v225_v16 = vld [vmem:[%s3227_s5 + $0x30] sm:$0xff] }
 0x631   :  { %1985 = vmatmul.msk.f32.vlgmr.msrb.gmra.mxu1 %vm145_vm9, %v790_v61  ;;  %960 = vmatpush.msrb.mxu3 %v225_v16  ;;  %v224_v61 = vld [vmem:[%s3227_s5 + $0x28] sm:$0xff] }
 0x633   :  { %961 = vmatpush.msrb.mxu3 %v224_v61 }
 0x635   :  { %962 = vmatpush.msrb.mxu3 %v223_v0 }
 0x637   :  { %v782_v10 = vpop.permute.xlu1 %781  ;;  %963 = vmatpush.msrb.mxu3 %v222_v1 }
 0x638   :  { %v791_v63 = vsel %vm789_vm10, %v788_v9, %v782_v10  ;;  %v220_v9 = vld [vmem:[%s3227_s5 + $0x8] sm:$0xff]  ;;  %v219_v10 = vld [vmem:[%s3227_s5] sm:$0xff] }
 0x639   :  { %1986 = vmatmul.msk.f32.gmra.mxu1 %vm145_vm9, %v791_v63  ;;  %964 = vmatpush.msrb.mxu3 %v221_v2  ;;  %v2127_v63 = vld [vmem:[%s3225_s3 + $0x8] ss:$0 sm:$0xff] }
 0x63b   :  { %965 = vmatpush.msrb.mxu3 %v220_v9 }
 0x63d   :  { %966 = vmatpush.msrb.mxu3 %v219_v10 }
 0x6ae   :  { %v833_v12 = vpop.f32.mrf.mxu1 }
 0x6af   :  { %v834_v14 = vadd.f32 %v2124_v58, %v833_v12 }
 0x6b1   :  { %v839_v15 = vadd.f32 %v834_v14, %v2447_v34 }
 0x6b3   :  { %v843_v17 = vsel %vm145_vm9, %v839_v15, 0.0 }
 0x6b4   :  { %844 = vadd.xlane.f32.xlu0 %v843_v17 }
 0x6b6   :  { %v836_v18 = vpop.f32.mrf.mxu1 }
 0x6b7   :  { %v837_v19 = vadd.f32 %v2124_v58, %v836_v18 }
 0x6b9   :  { %v840_v21 = vadd.f32 %v837_v19, %v2451_v39  ;;  %v218_v39 = vld [vmem:[%s3226_s4 + $0x38] sm:$0xff] }
 0x6ba   :  { %913 = vmatpush.msrb.mxu2 %v218_v39 }
 0x6bb   :  { %v846_v26 = vsel %vm145_vm9, %v840_v21, 0.0 }
 0x6bc   :  { %847 = vadd.xlane.f32.xlu1 %v846_v26  ;;  %914 = vmatpush.msrb.mxu2 %v216_v37 }
 0x6be   :  { %915 = vmatpush.msrb.mxu2 %v214_v30 }
 0x6c0   :  { %916 = vmatpush.msrb.mxu2 %v212_v45  ;;  %v2128_v45 = vld [vmem:[%s3225_s3 + $0x9] ss:$0 sm:$0xff] }
 0x727   :  { %v845_v24 = vpop.xlane.xlu0 %844 }
 0x728   :  { %v849_v25 = vmul.f32 %v845_v24, %v2405_v56 }
 0x72a   :  { %v851_v27 = vsub.f32 %v839_v15, %v849_v25 }
 0x72c   :  { %v853_v29 = vmul.f32 %v851_v27, %v851_v27 }
 0x72e   :  { %v855_v31 = vsel %vm145_vm9, %v853_v29, 0.0 }
 0x72f   :  { %856 = vadd.xlane.f32.xlu2 %v855_v31  ;;  %v848_v32 = vpop.xlane.xlu1 %847 }
 0x730   :  { %v850_v34 = vmul.f32 %v848_v32, %v2405_v56 }
 0x732   :  { %v852_v33 = vsub.f32 %v840_v21, %v850_v34 }
 0x734   :  { %v854_v35 = vmul.f32 %v852_v33, %v852_v33 }
 0x736   :  { %v858_v36 = vsel %vm145_vm9, %v854_v35, 0.0 }
 0x737   :  { %859 = vadd.xlane.f32.xlu0 %v858_v36 }
 0x7a2   :  { %v857_v50 = vpop.xlane.xlu2 %856 }
 0x7a3   :  { %v861_v38 = vmul.f32 %v857_v50, %v2405_v56 }
 0x7a5   :  { %v863_v46 = vadd.f32 1e-12, %v861_v38 }
 0x7a7   :  { %2179 = vrsqrt.f32 %v863_v46  ;;  %vm871_vm12 = vweird.f32 %v863_v46 }
 0x7aa   :  { %v860_v47 = vpop.xlane.xlu0 %859 }
 0x7ab   :  { %v862_v48 = vmul.f32 %v860_v47, %v2405_v56 }
 0x7ad   :  { %v2180_v20 = vpop.eup %2179  ;;  %v864_v42 = vadd.f32 1e-12, %v862_v48 }
 0x7ae   :  { %v866_v44 = vmul.f32 %v2180_v20, %v863_v46  ;;  %vm872_vm11 = vweird.f32 %v2180_v20 }
 0x7af   :  { %2181 = vrsqrt.f32 %v864_v42  ;;  %vm873_vm13 = vmor %vm871_vm12, %vm872_vm11  ;;  %vm881_vm15 = vweird.f32 %v864_v42 }
 0x7b0   :  { %v867_v62 = vmul.f32 %v2180_v20, %v866_v44 }
 0x7b2   :  { %v868_v13 = vmul.f32 0.5, %v867_v62 }
 0x7b4   :  { %v869_v41 = vsub.f32 1.5, %v868_v13 }
 0x7b5   :  { %v2182_v40 = vpop.eup %2181 }
 0x7b6   :  { %v870_v43 = vmul.f32 %v2180_v20, %v869_v41  ;;  %v876_v51 = vmul.f32 %v2182_v40, %v864_v42  ;;  %vm882_vm14 = vweird.f32 %v2182_v40 }
 0x7b7   :  { %vm883_vm0 = vmor %vm881_vm15, %vm882_vm14 }
 0x7b8   :  { %v874_v53 = vsel %vm873_vm13, %v2180_v20, %v870_v43  ;;  %v877_v49 = vmul.f32 %v2182_v40, %v876_v51 }
 0x7b9   :  { %v885_v3 = vmul.f32 %v874_v53, %v851_v27 }
 0x7ba   :  { %v878_v5 = vmul.f32 0.5, %v877_v49 }
 0x7bb   :  { %v888_v8 = vmul.f32 %v2125_v52, %v885_v3 }
 0x7bc   :  { %v879_v54 = vsub.f32 1.5, %v878_v5  ;;  %v2794_v5 = vld [vmem:[%s3226_s4 + $0x60] sm:$0xff] }
 0x7bd   :  { %v891_v55 = vadd.f32 %v2126_v4, %v888_v8  ;;  %v2800_v8 = vld [vmem:[%s3226_s4 + $0x50] sm:$0xff] }
 0x7be   :  { %v880_v7 = vmul.f32 %v2182_v40, %v879_v54  ;;  %v2806_v54 = vld [vmem:[%s3226_s4 + $0x40] sm:$0xff] }
 0x7bf   :  { %1987 = vmatmul.msk.f32.vlgmr.msrb.gmra.mxu2 %vm145_vm9, %v891_v55 }
 0x7c0   :  { %v884_v6 = vsel %vm883_vm0, %v2182_v40, %v880_v7  ;;  %v2116_v7 = vpack.i.bf16 %v2806_v54, %v2800_v8 }
 0x7c1   :  { %v886_v57 = vmul.f32 %v884_v6, %v852_v33 }
 0x7c3   :  { %v889_v59 = vmul.f32 %v2125_v52, %v886_v57 }
 0x7c5   :  { %v892_v11 = vadd.f32 %v2126_v4, %v889_v59  ;;  %v2788_v4 = vld [vmem:[%s3226_s4 + $0x70] sm:$0xff] }
 0x7c6   :  { %1066 = vmatpush.msra.mxu0 %v2788_v4 }
 0x7c7   :  { %1988 = vmatmul.msk.f32.gmra.mxu2 %vm145_vm9, %v892_v11 }
 0x7c8   :  { %1067 = vmatpush.msra.mxu0 %v2794_v5 }
 0x7ca   :  { %1068 = vmatpush.msra.mxu0 %v2800_v8 }
 0x7cc   :  { %1069 = vmatpush.msra.mxu0 %v2806_v54 }
 0x842   :  { %v918_v58 = vpop.f32.mrf.mxu2 }
 0x843   :  { %v919_v12 = vadd.f32 %v2127_v63, %v918_v58 }
 0x845   :  { %v926_v14 = vmul.f32 0.044715, %v919_v12  ;;  %v924_v34 = vmul.f32 0.5, %v919_v12 }
 0x847   :  { %v928_v15 = vmul.f32 %v926_v14, %v919_v12 }
 0x849   :  { %v930_v17 = vmul.f32 %v928_v15, %v919_v12 }
 0x84a   :  { %v921_v18 = vpop.f32.mrf.mxu2 }
 0x84b   :  { %v932_v19 = vadd.f32 %v930_v17, %v919_v12  ;;  %v922_v21 = vadd.f32 %v2127_v63, %v921_v18  ;;  %v2129_v12 = vld [vmem:[%s3225_s3 + $0xa] ss:$0 sm:$0xff]  ;;  %v2130_v18 = vld [vmem:[%s3225_s3 + $0xb] ss:$0 sm:$0xff] }
 0x84d   :  { %v934_v26 = vmul.f32 0.7978846, %v932_v19  ;;  %v927_v24 = vmul.f32 0.044715, %v922_v21  ;;  %v925_v39 = vmul.f32 0.5, %v922_v21 }
 0x84f   :  { %2183 = vtanh.f32 %v934_v26  ;;  %v929_v25 = vmul.f32 %v927_v24, %v922_v21 }
 0x851   :  { %v931_v27 = vmul.f32 %v929_v25, %v922_v21 }
 0x853   :  { %v933_v29 = vadd.f32 %v931_v27, %v922_v21 }
 0x855   :  { %v2184_v31 = vpop.eup %2183  ;;  %v935_v32 = vmul.f32 0.7978846, %v933_v29 }
 0x856   :  { %v938_v33 = vadd.f32 1.0, %v2184_v31 }
 0x857   :  { %2185 = vtanh.f32 %v935_v32 }
 0x858   :  { %v940_v35 = vmul.f32 %v938_v33, %v924_v34  ;;  %v2131_v34 = vld [vmem:[%s3225_s3 + $0xc] ss:$0 sm:$0xff] }
 0x85a   :  { %1989 = vmatmul.msk.f32.vlgmr.msrb.gmra.mxu3 %vm944_vm2, %v940_v35 }
 0x85d   :  { %v2186_v36 = vpop.eup %2185 }
 0x85e   :  { %v939_v37 = vadd.f32 1.0, %v2186_v36 }
 0x860   :  { %v941_v30 = vmul.f32 %v939_v37, %v925_v39 }
 0x862   :  { %1990 = vmatmul.msk.f32.gmra.mxu3 %vm944_vm2, %v941_v30 }
 0x8dd   :  { %v968_v50 = vpop.f32.mrf.mxu3 }
 0x8de   :  { %v969_v38 = vadd.f32 %v2128_v45, %v968_v50 }
 0x8e0   :  { %v974_v46 = vadd.f32 %v969_v38, %v891_v55  ;;  %v2111_v55 = vpack.i.bf16 %v2794_v5, %v2788_v4 }
 0x8e2   :  { %v978_v47 = vsel %vm145_vm9, %v974_v46, 0.0 }
 0x8e3   :  { %979 = vadd.xlane.f32.xlu1 %v978_v47 }
 0x8e5   :  { %v971_v48 = vpop.f32.mrf.mxu3 }
 0x8e6   :  { %v972_v20 = vadd.f32 %v2128_v45, %v971_v48 }
 0x8e8   :  { %v975_v42 = vadd.f32 %v972_v20, %v892_v11 }
 0x8ea   :  { %v981_v44 = vsel %vm145_vm9, %v975_v42, 0.0 }
 0x8eb   :  { %982 = vadd.xlane.f32.xlu2 %v981_v44 }
 0x956   :  { %v980_v62 = vpop.xlane.xlu1 %979 }
 0x957   :  { %v984_v13 = vmul.f32 %v980_v62, %v2405_v56 }
 0x959   :  { %v986_v41 = vsub.f32 %v974_v46, %v984_v13 }
 0x95b   :  { %v988_v40 = vmul.f32 %v986_v41, %v986_v41 }
 0x95d   :  { %v990_v43 = vsel %vm145_vm9, %v988_v40, 0.0 }
 0x95e   :  { %v983_v51 = vpop.xlane.xlu2 %982  ;;  %991 = vadd.xlane.f32.xlu0 %v990_v43 }
 0x95f   :  { %v985_v52 = vmul.f32 %v983_v51, %v2405_v56 }
 0x961   :  { %v987_v53 = vsub.f32 %v975_v42, %v985_v52  ;;  %v2237_v52 = vld [vmem:[%s3223_s1 + $0x10] sm:$0xff] }
 0x963   :  { %v989_v49 = vmul.f32 %v987_v53, %v987_v53 }
 0x965   :  { %v993_v3 = vsel %vm145_vm9, %v989_v49, 0.0 }
 0x966   :  { %994 = vadd.xlane.f32.xlu1 %v993_v3 }
 0x9d1   :  { %v992_v6 = vpop.xlane.xlu0 %991 }
 0x9d2   :  { %v996_v57 = vmul.f32 %v992_v6, %v2405_v56 }
 0x9d4   :  { %v998_v59 = vadd.f32 1e-12, %v996_v57 }
 0x9d6   :  { %2187 = vrsqrt.f32 %v998_v59  ;;  %vm1006_vm5 = vweird.f32 %v998_v59 }
 0x9d9   :  { %v995_v11 = vpop.xlane.xlu1 %994 }
 0x9da   :  { %v997_v60 = vmul.f32 %v995_v11, %v2405_v56 }
 0x9dc   :  { %v2188_v16 = vpop.eup %2187  ;;  %v999_v61 = vadd.f32 1e-12, %v997_v60 }
 0x9dd   :  { %v1001_v0 = vmul.f32 %v2188_v16, %v998_v59  ;;  %vm1007_vm3 = vweird.f32 %v2188_v16  ;;  %v2238_v59 = vld [vmem:[%s3223_s1 + $0x30] sm:$0xff] }
 0x9de   :  { %2189 = vrsqrt.f32 %v999_v61  ;;  %vm1008_vm6 = vmor %vm1006_vm5, %vm1007_vm3  ;;  %vm1016_vm8 = vweird.f32 %v999_v61 }
 0x9df   :  { %v1002_v1 = vmul.f32 %v2188_v16, %v1001_v0 }
 0x9e1   :  { %v1003_v2 = vmul.f32 0.5, %v1002_v1 }
 0x9e3   :  { %v1004_v9 = vsub.f32 1.5, %v1003_v2 }
 0x9e4   :  { %v2190_v10 = vpop.eup %2189 }
 0x9e5   :  { %v1005_v63 = vmul.f32 %v2188_v16, %v1004_v9  ;;  %v1011_v58 = vmul.f32 %v2190_v10, %v999_v61  ;;  %vm1017_vm7 = vweird.f32 %v2190_v10 }
 0x9e6   :  { %vm1018_vm11 = vmor %vm1016_vm8, %vm1017_vm7 }
 0x9e7   :  { %v1009_v14 = vsel %vm1008_vm6, %v2188_v16, %v1005_v63  ;;  %v1012_v15 = vmul.f32 %v2190_v10, %v1011_v58  ;;  %v2239_v16 = vld [vmem:[%s3223_s1 + $0x18] sm:$0xff] }
 0x9e8   :  { %v1020_v17 = vmul.f32 %v1009_v14, %v986_v41  ;;  %v2240_v63 = vld [vmem:[%s3223_s1 + $0x38] sm:$0xff] }
 0x9e9   :  { %v1013_v19 = vmul.f32 0.5, %v1012_v15 }
 0x9ea   :  { %v1023_v21 = vmul.f32 %v2129_v12, %v1020_v17 }
 0x9eb   :  { %v1014_v26 = vsub.f32 1.5, %v1013_v19 }
 0x9ec   :  { %v2821_v24 = vadd.f32 %v2130_v18, %v1023_v21 }
 0x9ed   :  { %v1015_v25 = vmul.f32 %v2190_v10, %v1014_v26 }
 0x9ee   :  { %2007 = vmatmul.msk.f32.vlgmr.msra.gmra.mxu0 %vm145_vm9, %v2821_v24 }
 0x9ef   :  { %v1019_v27 = vsel %vm1018_vm11, %v2190_v10, %v1015_v25  ;;  %v2242_v25 = vld [vmem:[%s3223_s1] sm:$0xff] }
 0x9f0   :  { %v1021_v29 = vmul.f32 %v1019_v27, %v987_v53 }
 0x9f2   :  { %v1024_v31 = vmul.f32 %v2129_v12, %v1021_v29  ;;  %v2241_v12 = vld [vmem:[%s3223_s1 + $0x20] sm:$0xff] }
 0x9f4   :  { %v2825_v32 = vadd.f32 %v2130_v18, %v1024_v31  ;;  %v2243_v31 = vld [vmem:[%s3223_s1 + $0x28] sm:$0xff] }
 0x9f6   :  { %2008 = vmatmul.msk.f32.gmra.mxu0 %vm145_vm9, %v2825_v32 }
 0xa6b   :  { %v1071_v33 = vpop.f32.mrf.mxu0 }
 0xa6c   :  { %v2832_v35 = vadd.f32 %v2131_v34, %v1071_v33 }
 0xa6e   :  { %1079 = vrot.lane.b32.xlu1 %v2832_v35, %s2278_s9 }
 0xa73   :  { %v1074_v36 = vpop.f32.mrf.mxu0 }
 0xa74   :  { %v2836_v39 = vadd.f32 %v2131_v34, %v1074_v36 }
 0xa76   :  { %1087 = vrot.lane.b32.xlu1 %v2832_v35, %s2276_s30  ;;  %1085 = vrot.lane.b32.xlu0 %v2836_v39, %s2275_s29 }
 0xa77   :  { %1081 = vrot.lane.b32.xlu2 %v2836_v39, %s2278_s9 }
 0xa7e   :  { %1083 = vrot.lane.b32.xlu0 %v2832_v35, %s2275_s29 }
 0xa7f   :  { %1089 = vrot.lane.b32.xlu2 %v2836_v39, %s2276_s30 }
 0xad1   :  { %v2848_v37 = vpop.permute.xlu2 %1081 }
 0xad2   :  { %1128 = vrot.lane.b32.xlu0 %v2848_v37, %s2277_s8 }
 0xad9   :  { %v2864_v38 = vpop.permute.xlu2 %1089 }
 0xae0   :  { %v2852_v30 = vpop.permute.xlu1 %1079 }
 0xae1   :  { %1126 = vrot.lane.b32.xlu1 %v2852_v30, %s2277_s8 }
 0xae8   :  { %v2856_v45 = vpop.permute.xlu0 %1085  ;;  %v2858_v50 = vpop.permute.xlu1 %1087 }
 0xae9   :  { %1163 = vrot.lane.b32.xlu2 %v2856_v45, %s2277_s8  ;;  %1196 = vrot.lane.b32.xlu1 %v2858_v50, %s2277_s8 }
 0xaf0   :  { %v2866_v46 = vpop.permute.xlu0 %1083 }
 0xaf1   :  { %1161 = vrot.lane.b32.xlu0 %v2866_v46, %s2277_s8  ;;  %1198 = vrot.lane.b32.xlu2 %v2864_v38, %s2277_s8 }
 0xaf9   :  { %1093 = vrot.lane.b32.xlu0 %v2836_v39, %s2277_s8  ;;  %1091 = vrot.lane.b32.xlu2 %v2832_v35, %s2277_s8 }
 0xb43   :  { %v1164_v47 = vpop.permute.xlu2 %1163 }
 0xb44   :  { %v1129_v48 = vpop.permute.xlu0 %1128  ;;  %2017 = vmatpush.xpose.msk.msra.mxu3 %vm276_vm1, %v1164_v47 }
 0xb45   :  { %2013 = vmatpush.xpose.msk.msra.mxu2 %vm276_vm1, %v1129_v48  ;;  %v2244_v48 = vld [vmem:[%s3223_s1 + $0x8] sm:$0xff] }
 0xb4b   :  { %v1199_v20 = vpop.permute.xlu2 %1198 }
 0xb4c   :  { %2021 = vmatpush.xpose.msk.msrb.mxu0 %vm276_vm1, %v1199_v20 }
 0xb53   :  { %v1127_v42 = vpop.permute.xlu1 %1126  ;;  %v1092_v41 = vpop.permute.xlu2 %1091 }
 0xb54   :  { %2014 = vmatpush.xpose.msk.msra.mxu2 %vm276_vm1, %v1127_v42 }
 0xb57   :  { %2015 = vmatmul.msk.f32.vlgmr.msra.gmra.mxu2 %vm276_vm1, %v2852_v30 }
 0xb5b   :  { %v1197_v44 = vpop.permute.xlu1 %1196 }
 0xb5c   :  { %2022 = vmatpush.xpose.msk.msrb.mxu0 %vm276_vm1, %v1197_v44 }
 0xb5f   :  { %2016 = vmatmul.msk.f32.gmra.mxu2 %vm276_vm1, %v2848_v37  ;;  %2023 = vmatmul.msk.f32.vlgmr.msrb.gmra.mxu0 %vm276_vm1, %v2858_v50 }
 0xb63   :  { %v1162_v62 = vpop.permute.xlu0 %1161 }
 0xb64   :  { %2018 = vmatpush.xpose.msk.msra.mxu3 %vm276_vm1, %v1162_v62 }
 0xb67   :  { %2019 = vmatmul.msk.f32.vlgmr.msra.gmra.mxu3 %vm276_vm1, %v2866_v46  ;;  %2024 = vmatmul.msk.f32.gmra.mxu0 %vm276_vm1, %v2864_v38 }
 0xb6b   :  { %v1094_v13 = vpop.permute.xlu0 %1093 }
 0xb6c   :  { %2009 = vmatpush.xpose.msk.msra.mxu1 %vm276_vm1, %v1094_v13 }
 0xb6f   :  { %2020 = vmatmul.msk.f32.gmra.mxu3 %vm276_vm1, %v2856_v45 }
 0xb70   :  { %2010 = vmatpush.xpose.msk.msra.mxu1 %vm276_vm1, %v1092_v41 }
 0xb73   :  { %2011 = vmatmul.msk.f32.vlgmr.msra.gmra.mxu1 %vm276_vm1, %v2832_v35 }
 0xb7b   :  { %2012 = vmatmul.msk.f32.gmra.mxu1 %vm276_vm1, %v2836_v39 }
 0xbda   :  { %v1155_v40 = vpop.f32.mrf.mxu2 }
 0xbdb   :  { %v1233_v43 = vmul.f32 0.35355338, %v1155_v40 }
 0xbdc   :  { %v1225_v51 = vpop.f32.mrf.mxu0 }
 0xbdd   :  { %v1241_v53 = vadd.f32 %v2237_v52, %v1233_v43  ;;  %v1237_v49 = vmul.f32 0.35355338, %v1225_v51 }
 0xbdf   :  { %v1253_v3 = vsel %vm90_vm4, %v1241_v53, -inf  ;;  %v1245_v11 = vadd.f32 %v2238_v59, %v1237_v49 }
 0xbe0   :  { %1254 = vmax.xlane.f32.xlu1 %v1253_v3 }
 0xbe1   :  { %v1265_v2 = vsel %vm90_vm4, %v1245_v11, -inf }
 0xbe2   :  { %v1158_v6 = vpop.f32.mrf.mxu2 }
 0xbe3   :  { %v1234_v57 = vmul.f32 0.35355338, %v1158_v6 }
 0xbe4   :  { %v1228_v60 = vpop.f32.mrf.mxu0 }
 0xbe5   :  { %v1242_v61 = vadd.f32 %v2239_v16, %v1234_v57  ;;  %v1238_v0 = vmul.f32 0.35355338, %v1228_v60 }
 0xbe7   :  { %v1256_v1 = vsel %vm90_vm4, %v1242_v61, -inf  ;;  %v1246_v58 = vadd.f32 %v2240_v63, %v1238_v0 }
 0xbe8   :  { %1257 = vmax.xlane.f32.xlu2 %v1256_v1  ;;  %1266 = vmax.xlane.f32.xlu1 %v1265_v2 }
 0xbe9   :  { %v1268_v17 = vsel %vm90_vm4, %v1246_v58, -inf }
 0xbea   :  { %v1190_v9 = vpop.f32.mrf.mxu3 }
 0xbeb   :  { %v1235_v10 = vmul.f32 0.35355338, %v1190_v9 }
 0xbed   :  { %v1243_v14 = vadd.f32 %v2241_v12, %v1235_v10 }
 0xbef   :  { %v1259_v15 = vsel %vm90_vm4, %v1243_v14, -inf }
 0xbf0   :  { %1260 = vmax.xlane.f32.xlu0 %v1259_v15  ;;  %v1120_v18 = vpop.f32.mrf.mxu1  ;;  %1269 = vmax.xlane.f32.xlu2 %v1268_v17 }
 0xbf1   :  { %v1231_v19 = vmul.f32 0.35355338, %v1120_v18 }
 0xbf2   :  { %v1193_v21 = vpop.f32.mrf.mxu3 }
 0xbf3   :  { %v1236_v26 = vmul.f32 0.35355338, %v1193_v21  ;;  %v2923_v27 = vadd.f32 %v2242_v25, %v1231_v19  ;;  %v2091_v19 = vpack.i.bf16 %v2856_v45, %v2848_v37  ;;  %v2101_v21 = vpack.i.bf16 %v2858_v50, %v2864_v38 }
 0xbf5   :  { %v1247_v29 = vsel %vm90_vm4, %v2923_v27, -inf  ;;  %v1244_v34 = vadd.f32 %v2243_v31, %v1236_v26  ;;  %v2096_v26 = vpack.i.bf16 %v2866_v46, %v2852_v30 }
 0xbf6   :  { %1248 = vmax.xlane.f32.xlu1 %v1247_v29  ;;  %v2106_v29 = vpack.i.bf16 %v2832_v35, %v2836_v39 }
 0xbf7   :  { %v1262_v33 = vsel %vm90_vm4, %v1244_v34, -inf }
 0xbf8   :  { %1263 = vmax.xlane.f32.xlu0 %v1262_v33  ;;  %v1123_v36 = vpop.f32.mrf.mxu1 }
 0xbf9   :  { %v1232_v47 = vmul.f32 0.35355338, %v1123_v36 }
 0xbfb   :  { %v1240_v20 = vadd.f32 %v2244_v48, %v1232_v47 }
 0xbfd   :  { %v1250_v42 = vsel %vm90_vm4, %v1240_v20, -inf }
 0xbfe   :  { %1251 = vmax.xlane.f32.xlu2 %v1250_v42 }
 0xc53   :  { %v1255_v44 = vpop.xlane.xlu1 %1254 }
 0xc54   :  { %v1273_v62 = vsub.f32 %v1241_v53, %v1255_v44 }
 0xc56   :  { %v1283_v13 = vmul.f32 1.442695, %v1273_v62 }
 0xc58   :  { %2191 = vpow2.f32 %v1283_v13 }
 0xc5b   :  { %v1258_v41 = vpop.xlane.xlu2 %1257  ;;  %v1267_v40 = vpop.xlane.xlu1 %1266 }
 0xc5c   :  { %v1277_v43 = vsub.f32 %v1245_v11, %v1267_v40  ;;  %v1274_v0 = vsub.f32 %v1242_v61, %v1258_v41 }
 0xc5e   :  { %v2935_v51 = vpop.eup %2191  ;;  %v1291_v52 = vmul.f32 1.442695, %v1277_v43  ;;  %v1285_v1 = vmul.f32 1.442695, %v1274_v0 }
 0xc5f   :  { %v1301_v49 = vsel %vm90_vm4, %v2935_v51, 0.0 }
 0xc60   :  { %1302 = vadd.xlane.f32.xlu0 %v1301_v49  ;;  %2193 = vpow2.f32 %v1291_v52 }
 0xc63   :  { %v1261_v3 = vpop.xlane.xlu0 %1260  ;;  %v1270_v6 = vpop.xlane.xlu2 %1269 }
 0xc64   :  { %v1275_v57 = vsub.f32 %v1243_v14, %v1261_v3  ;;  %v1278_v59 = vsub.f32 %v1246_v58, %v1270_v6 }
 0xc66   :  { %v1287_v60 = vmul.f32 1.442695, %v1275_v57  ;;  %v1293_v16 = vmul.f32 1.442695, %v1278_v59  ;;  %v2939_v53 = vpop.eup %2193 }
 0xc67   :  { %v1313_v11 = vsel %vm90_vm4, %v2939_v53, 0.0 }
 0xc68   :  { %2195 = vpow2.f32 %v1287_v60  ;;  %1314 = vadd.xlane.f32.xlu2 %v1313_v11 }
 0xc69   :  { %2197 = vpow2.f32 %v1293_v16  ;;  %v1249_v25 = vpop.xlane.xlu1 %1248 }
 0xc6a   :  { %2199 = vpow2.f32 %v1285_v1  ;;  %v1271_v31 = vsub.f32 %v2923_v27, %v1249_v25 }
 0xc6b   :  { %v1264_v2 = vpop.xlane.xlu0 %1263 }
 0xc6c   :  { %v1276_v9 = vsub.f32 %v1244_v34, %v1264_v2  ;;  %v1279_v37 = vmul.f32 1.442695, %v1271_v31 }
 0xc6e   :  { %v2943_v10 = vpop.eup %2195  ;;  %v1289_v63 = vmul.f32 1.442695, %v1276_v9 }
 0xc6f   :  { %v2945_v12 = vpop.eup %2197  ;;  %v1307_v58 = vsel %vm90_vm4, %v2943_v10, 0.0 }
 0xc70   :  { %2201 = vpow2.f32 %v1289_v63  ;;  %1308 = vadd.xlane.f32.xlu1 %v1307_v58  ;;  %v1316_v61 = vsel %vm90_vm4, %v2945_v12, 0.0  ;;  %v2951_v14 = vpop.eup %2199 }
 0xc71   :  { %1317 = vadd.xlane.f32.xlu0 %v1316_v61  ;;  %v1304_v18 = vsel %vm90_vm4, %v2951_v14, 0.0  ;;  %2203 = vpow2.f32 %v1279_v37  ;;  %v1252_v45 = vpop.xlane.xlu2 %1251 }
 0xc72   :  { %v1272_v50 = vsub.f32 %v1240_v20, %v1252_v45 }
 0xc74   :  { %v1281_v38 = vmul.f32 1.442695, %v1272_v50 }
 0xc76   :  { %v2953_v15 = vpop.eup %2201  ;;  %2205 = vpow2.f32 %v1281_v38 }
 0xc77   :  { %v1310_v17 = vsel %vm90_vm4, %v2953_v15, 0.0  ;;  %v2976_v30 = vpop.eup %2203 }
 0xc78   :  { %1311 = vadd.xlane.f32.xlu1 %v1310_v17  ;;  %v1295_v46 = vsel %vm90_vm4, %v2976_v30, 0.0 }
 0xc79   :  { %1305 = vadd.xlane.f32.xlu0 %v1304_v18 }
 0xc7c   :  { %v2984_v35 = vpop.eup %2205 }
 0xc7d   :  { %v1298_v4 = vsel %vm90_vm4, %v2984_v35, 0.0 }
 0xc80   :  { %2092 = vrot.lane.b32.xlu2 %v2091_v19, %s2279_s24 }
 0xc8d   :  { %2102 = vrot.lane.b32.xlu0 %v2101_v21, %s2279_s24 }
 0xc91   :  { %2097 = vrot.lane.b32.xlu1 %v2096_v26, %s2279_s24 }
 0xc99   :  { %2107 = vrot.lane.b32.xlu1 %v2106_v29, %s2279_s24 }
 0xca1   :  { %2112 = vrot.lane.b32.xlu1 %v2111_v55, %s2280_s25 }
 0xca9   :  { %2117 = vrot.lane.b32.xlu1 %v2116_v7, %s2280_s25  ;;  %1296 = vadd.xlane.f32.xlu2 %v1295_v46 }
 0xcb7   :  { %1299 = vadd.xlane.f32.xlu0 %v1298_v4 }
 0xcd3   :  { %v1303_v5 = vpop.xlane.xlu0 %1302 }
 0xcd4   :  { %2207 = vrcp.f32 %v1303_v5  ;;  %v1356_v3 = vand.u32 2147483647, %v1303_v5  ;;  %v1358_v60 = vand.u32 2147483648, %v1303_v5  ;;  %vm1352_vm13 = vweird.f32 %v1303_v5 }
 0xcd6   :  { %vm1357_vm15 = vcmp.eq.f32.partialorder %v1356_v3, 8.507059e+37  ;;  %v1359_v63 = vor.u32 1.1754944e-38, %v1358_v60 }
 0xcda   :  { %v2208_v8 = vpop.eup %2207 }
 0xcdb   :  { %v1315_v55 = vpop.xlane.xlu2 %1314  ;;  %v1348_v7 = vmul.f32 %v2208_v8, %v1303_v5  ;;  %vm1353_vm12 = vweird.f32 %v2208_v8 }
 0xcdc   :  { %2209 = vrcp.f32 %v1315_v55  ;;  %vm1354_vm14 = vmor %vm1352_vm13, %vm1353_vm12  ;;  %vm1408_vm3 = vweird.f32 %v1315_v55  ;;  %v1412_v58 = vand.u32 2147483647, %v1315_v55  ;;  %v1414_v61 = vand.u32 2147483648, %v1315_v55 }
 0xcdd   :  { %v1349_v42 = vsub.f32 1.0, %v1348_v7 }
 0xcde   :  { %vm1413_vm8 = vcmp.eq.f32.partialorder %v1412_v58, 8.507059e+37  ;;  %v1415_v45 = vor.u32 1.1754944e-38, %v1414_v61 }
 0xcdf   :  { %v1350_v13 = vmul.f32 %v2208_v8, %v1349_v42 }
 0xce1   :  { %v1351_v6 = vadd.f32 %v2208_v8, %v1350_v13 }
 0xce2   :  { %v2210_v36 = vpop.eup %2209 }
 0xce3   :  { %v2988_v39 = vpop.xlane.xlu1 %1308  ;;  %v2093_v34 = vpop.permute.xlu2 %2092  ;;  %v1404_v44 = vmul.f32 %v2210_v36, %v1315_v55  ;;  %v1355_v1 = vsel %vm1354_vm14, %v2208_v8, %v1351_v6  ;;  %vm1409_vm0 = vweird.f32 %v2210_v36 }
 0xce4   :  { %v2990_v27 = vpop.xlane.xlu0 %1317  ;;  %v2095_v33 = vunpack.i.h.bf16 %v2093_v34  ;;  %v2094_v54 = vunpack.i.l.bf16 %v2093_v34  ;;  %2211 = vrcp.f32 %v2988_v39  ;;  %v1360_v21 = vsel %vm1357_vm15, %v1359_v63, %v1355_v1  ;;  %vm3019_vm6 = vmor %vm1408_vm3, %vm1409_vm0 }
 0xce5   :  { %2213 = vrcp.f32 %v2990_v27  ;;  %v1405_v41 = vsub.f32 1.0, %v1404_v44  ;;  %v1386_v25 = vand.u32 2147483648, %v2988_v39  ;;  %vm1380_vm7 = vweird.f32 %v2988_v39 }
 0xce6   :  { %1535 = vmatpush.msrb.mxu3 %v2095_v33  ;;  %1500 = vmatpush.msrb.mxu2 %v2094_v54  ;;  %v1384_v37 = vand.u32 2147483647, %v2988_v39  ;;  %vm1422_vm11 = vweird.f32 %v2990_v27  ;;  %v1428_v50 = vand.u32 2147483648, %v2990_v27  ;;  %v1433_v55 = vmul.f32 %v2935_v51, %v1360_v21 }
 0xce7   :  { %v1406_v57 = vmul.f32 %v2210_v36, %v1405_v41  ;;  %v1387_v33 = vor.u32 1.1754944e-38, %v1386_v25 }
 0xce8   :  { %vm1385_vm13 = vcmp.eq.f32.partialorder %v1384_v37, 8.507059e+37  ;;  %v1429_v60 = vor.u32 1.1754944e-38, %v1428_v50 }
 0xce9   :  { %v1407_v2 = vadd.f32 %v2210_v36, %v1406_v57 }
 0xcea   :  { %v2995_v48 = vpop.eup %2211 }
 0xceb   :  { %v2993_v47 = vpop.xlane.xlu1 %1311  ;;  %v1376_v62 = vmul.f32 %v2995_v48, %v2988_v39  ;;  %v3004_v40 = vpop.eup %2213  ;;  %vm1381_vm5 = vweird.f32 %v2995_v48  ;;  %v1411_v29 = vsel %vm3019_vm6, %v2210_v36, %v1407_v2  ;;  %v1426_v39 = vand.u32 2147483647, %v2990_v27 }
 0xcec   :  { %v2998_v20 = vpop.xlane.xlu0 %1305  ;;  %2215 = vrcp.f32 %v2993_v47  ;;  %v1418_v59 = vmul.f32 %v3004_v40, %v2990_v27  ;;  %vm1382_vm12 = vmor %vm1380_vm7, %vm1381_vm5  ;;  %v1416_v34 = vsel %vm1413_vm8, %v1415_v45, %v1411_v29  ;;  %vm1394_vm14 = vweird.f32 %v2993_v47 }
 0xced   :  { %2217 = vrcp.f32 %v2998_v20  ;;  %v1377_v52 = vsub.f32 1.0, %v1376_v62  ;;  %vm1423_vm15 = vweird.f32 %v3004_v40  ;;  %vm1366_vm0 = vweird.f32 %v2998_v20 }
 0xcee   :  { %v1419_v9 = vsub.f32 1.0, %v1418_v59  ;;  %v1372_v62 = vand.u32 2147483648, %v2998_v20  ;;  %v1400_v13 = vand.u32 2147483648, %v2993_v47  ;;  %vm3051_vm6 = vmor %vm1422_vm11, %vm1423_vm15  ;;  %v1370_v57 = vand.u32 2147483647, %v2998_v20 }
 0xcef   :  { %v1378_v16 = vmul.f32 %v2995_v48, %v1377_v52  ;;  %v1398_v59 = vand.u32 2147483647, %v2993_v47  ;;  %vm1427_vm11 = vcmp.eq.f32.partialorder %v1426_v39, 8.507059e+37 }
 0xcf0   :  { %v1420_v31 = vmul.f32 %v3004_v40, %v1419_v9 }
 0xcf1   :  { %v1379_v17 = vadd.f32 %v2995_v48, %v1378_v16  ;;  %v1401_v16 = vor.u32 1.1754944e-38, %v1400_v13 }
 0xcf2   :  { %v3006_v43 = vpop.eup %2215  ;;  %v1421_v54 = vadd.f32 %v3004_v40, %v1420_v31 }
 0xcf3   :  { %v3008_v49 = vpop.eup %2217  ;;  %v1390_v11 = vmul.f32 %v3006_v43, %v2993_v47  ;;  %v1383_v38 = vsel %vm1382_vm12, %v2995_v48, %v1379_v17  ;;  %vm1395_vm3 = vweird.f32 %v3006_v43  ;;  %v1437_v48 = vmul.f32 %v2939_v53, %v1416_v34 }
 0xcf4   :  { %v1362_v0 = vmul.f32 %v3008_v49, %v2998_v20  ;;  %v1388_v7 = vsel %vm1385_vm13, %v1387_v33, %v1383_v38  ;;  %vm1367_vm5 = vweird.f32 %v3008_v49  ;;  %v1425_v6 = vsel %vm3051_vm6, %v3004_v40, %v1421_v54  ;;  %vm3065_vm7 = vmor %vm1394_vm14, %vm1395_vm3 }
 0xcf5   :  { %v1391_v19 = vsub.f32 1.0, %v1390_v11  ;;  %v1435_v53 = vmul.f32 %v2943_v10, %v1388_v7  ;;  %vm1368_vm8 = vmor %vm1366_vm0, %vm1367_vm5  ;;  %v1373_v47 = vor.u32 1.1754944e-38, %v1372_v62  ;;  %vm1371_vm12 = vcmp.eq.f32.partialorder %v1370_v57, 8.507059e+37 }
 0xcf6   :  { %v1363_v18 = vsub.f32 1.0, %v1362_v0  ;;  %v1430_v0 = vsel %vm1427_vm11, %v1429_v60, %v1425_v6  ;;  %vm1399_vm13 = vcmp.eq.f32.partialorder %v1398_v59, 8.507059e+37 }
 0xcf7   :  { %v1392_v4 = vmul.f32 %v3006_v43, %v1391_v19  ;;  %v1438_v2 = vmul.f32 %v2945_v12, %v1430_v0 }
 0xcf8   :  { %v1364_v46 = vmul.f32 %v3008_v49, %v1363_v18 }
 0xcf9   :  { %v1393_v44 = vadd.f32 %v3006_v43, %v1392_v4 }
 0xcfa   :  { %v1365_v42 = vadd.f32 %v3008_v49, %v1364_v46 }
 0xcfb   :  { %v1397_v40 = vsel %vm3065_vm7, %v3006_v43, %v1393_v44 }
 0xcfc   :  { %v1369_v10 = vsel %vm1368_vm8, %v3008_v49, %v1365_v42  ;;  %v1402_v1 = vsel %vm1399_vm13, %v1401_v16, %v1397_v40 }
 0xcfd   :  { %v1374_v11 = vsel %vm1371_vm12, %v1373_v47, %v1369_v10  ;;  %v1436_v49 = vmul.f32 %v2953_v15, %v1402_v1 }
 0xcfe   :  { %v1434_v63 = vmul.f32 %v2951_v14, %v1374_v11  ;;  %v2132_v11 = vld [vmem:[%s3225_s3 + $0xd] ss:$0 sm:$0xff] }
 0xcff   :  { %v2103_v5 = vpop.permute.xlu0 %2102 }
 0xd00   :  { %v2104_v8 = vunpack.i.l.bf16 %v2103_v5  ;;  %v2105_v36 = vunpack.i.h.bf16 %v2103_v5 }
 0xd02   :  { %1570 = vmatpush.msra.mxu0 %v2104_v8 }
 0xd03   :  { %v2098_v51 = vpop.permute.xlu1 %2097 }
 0xd04   :  { %1571 = vmatpush.msra.mxu0 %v2105_v36  ;;  %v2100_v41 = vunpack.i.h.bf16 %v2098_v51  ;;  %v2099_v52 = vunpack.i.l.bf16 %v2098_v51 }
 0xd05   :  { %2031 = vmatmul.msk.f32.vlgmr.msra.gmra.mxu0 %vm90_vm4, %v1437_v48 }
 0xd06   :  { %1501 = vmatpush.msrb.mxu2 %v2099_v52  ;;  %1536 = vmatpush.msrb.mxu3 %v2100_v41 }
 0xd07   :  { %2027 = vmatmul.msk.f32.vlgmr.msrb.gmra.mxu2 %vm90_vm4, %v1433_v55  ;;  %2029 = vmatmul.msk.f32.vlgmr.msrb.gmra.mxu3 %vm90_vm4, %v1435_v53 }
 0xd0b   :  { %v2108_v20 = vpop.permute.xlu1 %2107 }
 0xd0c   :  { %v2109_v9 = vunpack.i.l.bf16 %v2108_v20  ;;  %v2110_v58 = vunpack.i.h.bf16 %v2108_v20 }
 0xd0d   :  { %2032 = vmatmul.msk.f32.gmra.mxu0 %vm90_vm4, %v1438_v2 }
 0xd0e   :  { %1465 = vmatpush.msrb.mxu1 %v2109_v9 }
 0xd0f   :  { %2028 = vmatmul.msk.f32.gmra.mxu2 %vm90_vm4, %v1434_v63  ;;  %2030 = vmatmul.msk.f32.gmra.mxu3 %vm90_vm4, %v1436_v49 }
 0xd10   :  { %1466 = vmatpush.msrb.mxu1 %v2110_v58 }
 0xd1c   :  { %v1297_v43 = vpop.xlane.xlu2 %1296 }
 0xd1d   :  { %2219 = vrcp.f32 %v1297_v43  ;;  %v1330_v12 = vand.u32 2147483648, %v1297_v43  ;;  %v1328_v21 = vand.u32 2147483647, %v1297_v43  ;;  %vm1324_vm15 = vweird.f32 %v1297_v43 }
 0xd1f   :  { %v1331_v15 = vor.u32 1.1754944e-38, %v1330_v12  ;;  %vm1329_vm3 = vcmp.eq.f32.partialorder %v1328_v21, 8.507059e+37 }
 0xd23   :  { %v2220_v61 = vpop.eup %2219 }
 0xd24   :  { %v1320_v17 = vmul.f32 %v2220_v61, %v1297_v43  ;;  %vm1325_vm14 = vweird.f32 %v2220_v61 }
 0xd25   :  { %vm1326_vm0 = vmor %vm1324_vm15, %vm1325_vm14 }
 0xd26   :  { %v1321_v18 = vsub.f32 1.0, %v1320_v17 }
 0xd28   :  { %v1322_v19 = vmul.f32 %v2220_v61, %v1321_v18 }
 0xd2a   :  { %v1300_v26 = vpop.xlane.xlu0 %1299  ;;  %v1323_v14 = vadd.f32 %v2220_v61, %v1322_v19 }
 0xd2b   :  { %2221 = vrcp.f32 %v1300_v26  ;;  %v1344_v38 = vand.u32 2147483648, %v1300_v26  ;;  %v1342_v4 = vand.u32 2147483647, %v1300_v26  ;;  %vm1338_vm6 = vweird.f32 %v1300_v26 }
 0xd2c   :  { %v1327_v25 = vsel %vm1326_vm0, %v2220_v61, %v1323_v14 }
 0xd2d   :  { %v1332_v29 = vsel %vm1329_vm3, %v1331_v15, %v1327_v25  ;;  %v1345_v55 = vor.u32 1.1754944e-38, %v1344_v38  ;;  %vm1343_vm8 = vcmp.eq.f32.partialorder %v1342_v4, 8.507059e+37  ;;  %v1996_v25 = vld [vmem:[%s3226_s4 + $0x68] sm:$0xff] }
 0xd2e   :  { %v1431_v31 = vmul.f32 %v2976_v30, %v1332_v29  ;;  %v1994_v29 = vld [vmem:[%s3226_s4 + $0x58] sm:$0xff] }
 0xd30   :  { %2025 = vmatmul.msk.f32.vlgmr.msrb.gmra.mxu1 %vm90_vm4, %v1431_v31  ;;  %v1992_v31 = vld [vmem:[%s3226_s4 + $0x48] sm:$0xff] }
 0xd31   :  { %v2222_v37 = vpop.eup %2221 }
 0xd32   :  { %v1334_v45 = vmul.f32 %v2222_v37, %v1300_v26  ;;  %vm1339_vm5 = vweird.f32 %v2222_v37 }
 0xd33   :  { %vm1340_vm7 = vmor %vm1338_vm6, %vm1339_vm5 }
 0xd34   :  { %v1335_v50 = vsub.f32 1.0, %v1334_v45 }
 0xd36   :  { %v1336_v46 = vmul.f32 %v2222_v37, %v1335_v50 }
 0xd38   :  { %v1337_v5 = vadd.f32 %v2222_v37, %v1336_v46 }
 0xd3a   :  { %v1341_v34 = vsel %vm1340_vm7, %v2222_v37, %v1337_v5 }
 0xd3b   :  { %v1346_v33 = vsel %vm1343_vm8, %v1345_v55, %v1341_v34 }
 0xd3c   :  { %v1432_v8 = vmul.f32 %v2984_v35, %v1346_v33  ;;  %v2113_v35 = vpop.permute.xlu1 %2112 }
 0xd3d   :  { %v2115_v48 = vunpack.i.h.bf16 %v2113_v35  ;;  %v2114_v42 = vunpack.i.l.bf16 %v2113_v35 }
 0xd3e   :  { %2026 = vmatmul.msk.f32.gmra.mxu1 %vm90_vm4, %v1432_v8 }
 0xd3f   :  { %1645 = vmatpush.msra.mxu1 %v2114_v42 }
 0xd41   :  { %1646 = vmatpush.msra.mxu1 %v2115_v48 }
 0xd44   :  { %v2118_v44 = vpop.permute.xlu1 %2117 }
 0xd45   :  { %v2120_v62 = vunpack.i.h.bf16 %v2118_v44  ;;  %v2119_v13 = vunpack.i.l.bf16 %v2118_v44 }
 0xd47   :  { %1647 = vmatpush.msra.mxu1 %v2119_v13 }
 0xd49   :  { %1648 = vmatpush.msra.mxu1 %v2120_v62 }
 0xd82   :  { %v1573_v30 = vpop.f32.mrf.mxu0 }
 0xd83   :  { %1597 = vrot.lane.b32.xlu2 %v1573_v30, %s2283_s28 }
 0xd8a   :  { %v1503_v39 = vpop.f32.mrf.mxu2  ;;  %v1538_v54 = vpop.f32.mrf.mxu3 }
 0xd8b   :  { %1581 = vrot.lane.b32.xlu1 %v1503_v39, %s2281_s26  ;;  %v1576_v51 = vpop.f32.mrf.mxu0  ;;  %v2133_v39 = vld [vmem:[%s3225_s3 + $0xe] ss:$0 sm:$0xff] }
 0xd92   :  { %v1506_v7 = vpop.f32.mrf.mxu2  ;;  %v1541_v36 = vpop.f32.mrf.mxu3 }
 0xd93   :  { %1589 = vrot.lane.b32.xlu1 %v1538_v54, %s2282_s27  ;;  %1583 = vrot.lane.b32.xlu0 %v1506_v7, %s2281_s26  ;;  %s2284_s26 = smov [#allocation2]  }
 0xd9b   :  { %1591 = vrot.lane.b32.xlu1 %v1541_v36, %s2282_s27  ;;  %v2134_v36 = vld [vmem:[%s3225_s3 + $0xf] ss:$0 sm:$0xff]  ;;  %s1938_s27 = sshll.u32 %s2284_s26, 4  ;;  %s1939_s27 = int_to_ptr.vmem [resolvable:$true] %s1938_s27 }
 0xda3   :  { %1599 = vrot.lane.b32.xlu1 %v1576_v51, %s2283_s28  ;;  %s1940_s28 = sshll.u32 %s3229_s7, 4  ;;  %s1941_s28 = int_to_ptr.hbm [resolvable:$true] %s1940_s28 }
 0xdad   :  { %v1468_v52 = vpop.f32.mrf.mxu1 }
 0xdbb   :  { %v1471_v10 = vpop.f32.mrf.mxu1 }
 0xddd   :  { %v1598_v6 = vpop.permute.xlu2 %1597 }
 0xdfd   :  { %v1582_v41 = vpop.permute.xlu1 %1581 }
 0xdfe   :  { %v1603_v3 = vsel %vm276_vm1, %v1468_v52, %v1582_v41 }
 0xe05   :  { %v1590_v53 = vpop.permute.xlu1 %1589  ;;  %v1584_v60 = vpop.permute.xlu0 %1583 }
 0xe06   :  { %v1605_v57 = vsel %vm90_vm4, %v1603_v3, %v1590_v53  ;;  %v1604_v40 = vsel %vm276_vm1, %v1471_v10, %v1584_v60  ;;  %v2003_v60 = vld [vmem:[%s3227_s5 + $0x60] sm:$0xff]  ;;  %v2002_v10 = vld [vmem:[%s3227_s5 + $0x58] sm:$0xff] }
 0xe07   :  { %v1607_v27 = vsel %vm789_vm10, %v1605_v57, %v1598_v6  ;;  %v2006_v57 = vld [vmem:[%s3227_s5 + $0x78] sm:$0xff] }
 0xe08   :  { %2033 = vmatmul.msk.f32.vlgmr.msra.gmra.mxu1 %vm145_vm9, %v1607_v27  ;;  %1775 = vmatpush.msra.mxu3 %v2006_v57  ;;  %v2005_v27 = vld [vmem:[%s3227_s5 + $0x70] sm:$0xff]  ;;  %v1878_v57 = vld [vmem:[%s3228_s6 + $0x18] sm:$0xff] }
 0xe0a   :  { %1776 = vmatpush.msra.mxu3 %v2005_v27 }
 0xe0d   :  { %v1592_v59 = vpop.permute.xlu1 %1591 }
 0xe0e   :  { %v1606_v47 = vsel %vm90_vm4, %v1604_v40, %v1592_v59  ;;  %v2004_v59 = vld [vmem:[%s3227_s5 + $0x68] sm:$0xff]  ;;  %v2001_v40 = vld [vmem:[%s3227_s5 + $0x50] sm:$0xff] }
 0xe0f   :  { %1777 = vmatpush.msra.mxu3 %v2004_v59  ;;  %v1877_v59 = vld [vmem:[%s3228_s6 + $0x8] sm:$0xff] }
 0xe11   :  { %1778 = vmatpush.msra.mxu3 %v2003_v60 }
 0xe13   :  { %1779 = vmatpush.msra.mxu3 %v2002_v10 }
 0xe15   :  { %v1600_v16 = vpop.permute.xlu1 %1599  ;;  %1780 = vmatpush.msra.mxu3 %v2001_v40 }
 0xe16   :  { %v1608_v0 = vsel %vm789_vm10, %v1606_v47, %v1600_v16  ;;  %v2000_v47 = vld [vmem:[%s3227_s5 + $0x48] sm:$0xff]  ;;  %v1999_v16 = vld [vmem:[%s3227_s5 + $0x40] sm:$0xff] }
 0xe17   :  { %2034 = vmatmul.msk.f32.gmra.mxu1 %vm145_vm9, %v1608_v0  ;;  %1781 = vmatpush.msra.mxu3 %v2000_v47  ;;  %v2135_v0 = vld [vmem:[%s3225_s3 + $0x10] ss:$0 sm:$0xff] }
 0xe19   :  { %1782 = vmatpush.msra.mxu3 %v1999_v16 }
 0xe85   :  { %v1650_v1 = vpop.f32.mrf.mxu1 }
 0xe86   :  { %v1651_v20 = vadd.f32 %v2132_v11, %v1650_v1 }
 0xe88   :  { %v1656_v2 = vadd.f32 %v1651_v20, %v2821_v24 }
 0xe8a   :  { %v1660_v9 = vsel %vm145_vm9, %v1656_v2, 0.0 }
 0xe8b   :  { %1661 = vadd.xlane.f32.xlu1 %v1660_v9 }
 0xe94   :  { %v1653_v63 = vpop.f32.mrf.mxu1 }
 0xe95   :  { %v1654_v49 = vadd.f32 %v2132_v11, %v1653_v63 }
 0xe97   :  { %v1657_v58 = vadd.f32 %v1654_v49, %v2825_v32  ;;  %v1998_v32 = vld [vmem:[%s3226_s4 + $0x78] sm:$0xff] }
 0xe98   :  { %1730 = vmatpush.msra.mxu2 %v1998_v32 }
 0xe99   :  { %v1663_v43 = vsel %vm145_vm9, %v1657_v58, 0.0 }
 0xe9a   :  { %1664 = vadd.xlane.f32.xlu2 %v1663_v43  ;;  %1731 = vmatpush.msra.mxu2 %v1996_v25 }
 0xe9c   :  { %1732 = vmatpush.msra.mxu2 %v1994_v29 }
 0xe9e   :  { %1733 = vmatpush.msra.mxu2 %v1992_v31  ;;  %v2136_v31 = vld [vmem:[%s3225_s3 + $0x11] ss:$0 sm:$0xff] }
 0xefe   :  { %v1662_v61 = vpop.xlane.xlu1 %1661 }
 0xeff   :  { %v1666_v17 = vmul.f32 %v1662_v61, %v2405_v56 }
 0xf01   :  { %v1668_v18 = vsub.f32 %v1656_v2, %v1666_v17 }
 0xf03   :  { %v1670_v12 = vmul.f32 %v1668_v18, %v1668_v18 }
 0xf05   :  { %v1672_v19 = vsel %vm145_vm9, %v1670_v12, 0.0 }
 0xf06   :  { %1673 = vadd.xlane.f32.xlu0 %v1672_v19 }
 0xf0d   :  { %v1665_v21 = vpop.xlane.xlu2 %1664 }
 0xf0e   :  { %v1667_v24 = vmul.f32 %v1665_v21, %v2405_v56 }
 0xf10   :  { %v1669_v26 = vsub.f32 %v1657_v58, %v1667_v24 }
 0xf12   :  { %v1671_v14 = vmul.f32 %v1669_v26, %v1669_v26 }
 0xf14   :  { %v1675_v15 = vsel %vm145_vm9, %v1671_v14, 0.0 }
 0xf15   :  { %1676 = vadd.xlane.f32.xlu1 %v1675_v15 }
 0xf79   :  { %v1674_v37 = vpop.xlane.xlu0 %1673 }
 0xf7a   :  { %v1678_v45 = vmul.f32 %v1674_v37, %v2405_v56 }
 0xf7c   :  { %v1680_v50 = vadd.f32 1e-12, %v1678_v45 }
 0xf7e   :  { %2223 = vrsqrt.f32 %v1680_v50  ;;  %vm1688_vm10 = vweird.f32 %v1680_v50 }
 0xf84   :  { %v2224_v38 = vpop.eup %2223 }
 0xf85   :  { %v1683_v46 = vmul.f32 %v2224_v38, %v1680_v50  ;;  %vm1689_vm1 = vweird.f32 %v2224_v38 }
 0xf86   :  { %vm1690_vm11 = vmor %vm1688_vm10, %vm1689_vm1 }
 0xf87   :  { %v1684_v4 = vmul.f32 %v2224_v38, %v1683_v46 }
 0xf88   :  { %v1677_v5 = vpop.xlane.xlu1 %1676 }
 0xf89   :  { %v1685_v55 = vmul.f32 0.5, %v1684_v4  ;;  %v1679_v34 = vmul.f32 %v1677_v5, %v2405_v56 }
 0xf8b   :  { %v1686_v33 = vsub.f32 1.5, %v1685_v55  ;;  %v1681_v8 = vadd.f32 1e-12, %v1679_v34 }
 0xf8d   :  { %v1687_v30 = vmul.f32 %v2224_v38, %v1686_v33  ;;  %2225 = vrsqrt.f32 %v1681_v8  ;;  %vm1698_vm13 = vweird.f32 %v1681_v8 }
 0xf8f   :  { %v1691_v54 = vsel %vm1690_vm11, %v2224_v38, %v1687_v30 }
 0xf90   :  { %v1702_v7 = vmul.f32 %v1691_v54, %v1668_v18 }
 0xf92   :  { %v1705_v51 = vmul.f32 %v2133_v39, %v1702_v7 }
 0xf93   :  { %v2226_v35 = vpop.eup %2225 }
 0xf94   :  { %v1693_v48 = vmul.f32 %v2226_v35, %v1681_v8  ;;  %v1708_v42 = vadd.f32 %v2134_v36, %v1705_v51  ;;  %vm1699_vm12 = vweird.f32 %v2226_v35 }
 0xf95   :  { %vm1700_vm14 = vmor %vm1698_vm13, %vm1699_vm12 }
 0xf96   :  { %v1694_v44 = vmul.f32 %v2226_v35, %v1693_v48  ;;  %2035 = vmatmul.msk.f32.vlgmr.msra.gmra.mxu2 %vm145_vm9, %v1708_v42 }
 0xf98   :  { %v1695_v62 = vmul.f32 0.5, %v1694_v44 }
 0xf9a   :  { %v1696_v13 = vsub.f32 1.5, %v1695_v62 }
 0xf9c   :  { %v1697_v41 = vmul.f32 %v2226_v35, %v1696_v13 }
 0xf9e   :  { %v1701_v52 = vsel %vm1700_vm14, %v2226_v35, %v1697_v41 }
 0xf9f   :  { %v1703_v3 = vmul.f32 %v1701_v52, %v1669_v26  ;;  %v1880_v52 = vld [vmem:[%s3228_s6 + $0x38] sm:$0xff] }
 0xfa0   :  { %1898 = vmatpush.msrb.mxu1 %v1880_v52 }
 0xfa1   :  { %v1706_v53 = vmul.f32 %v2133_v39, %v1703_v3  ;;  %v1879_v3 = vld [vmem:[%s3228_s6 + $0x28] sm:$0xff] }
 0xfa2   :  { %1899 = vmatpush.msrb.mxu1 %v1879_v3 }
 0xfa3   :  { %v1709_v6 = vadd.f32 %v2134_v36, %v1706_v53 }
 0xfa4   :  { %1900 = vmatpush.msrb.mxu1 %v1878_v57 }
 0xfa5   :  { %2036 = vmatmul.msk.f32.gmra.mxu2 %vm145_vm9, %v1709_v6 }
 0xfa6   :  { %1901 = vmatpush.msrb.mxu1 %v1877_v59 }
0x1019   :  { %v1735_v11 = vpop.f32.mrf.mxu2 }
0x101a   :  { %v1736_v1 = vadd.f32 %v2135_v0, %v1735_v11 }
0x101c   :  { %v1743_v20 = vmul.f32 0.044715, %v1736_v1  ;;  %v1741_v18 = vmul.f32 0.5, %v1736_v1 }
0x101e   :  { %v1745_v2 = vmul.f32 %v1743_v20, %v1736_v1  ;;  %v1845_v20 = vshrl.u32 %v29_v22, 7 }
0x1020   :  { %v1747_v9 = vmul.f32 %v1745_v2, %v1736_v1 }
0x1022   :  { %v1749_v63 = vadd.f32 %v1747_v9, %v1736_v1  ;;  %v2137_v9 = vld [vmem:[%s3225_s3 + $0x12] ss:$0 sm:$0xff] }
0x1024   :  { %v1751_v49 = vmul.f32 0.7978846, %v1749_v63 }
0x1026   :  { %2227 = vtanh.f32 %v1751_v49 }
0x1028   :  { %v1738_v58 = vpop.f32.mrf.mxu2 }
0x1029   :  { %v1739_v43 = vadd.f32 %v2135_v0, %v1738_v58  ;;  %v1846_v58 = vmul.u32 8, %v1845_v20 }
0x102b   :  { %v1744_v61 = vmul.f32 0.044715, %v1739_v43  ;;  %v1742_v32 = vmul.f32 0.5, %v1739_v43  ;;  %vm1847_vm7 = vcmp.eq.s32.totalorder %v2386_v23, %v1846_v58  ;;  %v1874_v23 = vld [vmem:[%s3228_s6 + $0x10] sm:$0xff] }
0x102c   :  { %v2228_v17 = vpop.eup %2227 }
0x102d   :  { %v1755_v12 = vadd.f32 1.0, %v2228_v17  ;;  %v1746_v19 = vmul.f32 %v1744_v61, %v1739_v43  ;;  %v2138_v17 = vld [vmem:[%s3225_s3 + $0x13] ss:$0 sm:$0xff] }
0x102f   :  { %v1757_v21 = vmul.f32 %v1755_v12, %v1741_v18  ;;  %v1748_v24 = vmul.f32 %v1746_v19, %v1739_v43  ;;  %v2039_v19 = vsel %vm1847_vm7, 1.0, %v2273_v28  ;;  %v1873_v28 = vld [vmem:[%s3228_s6] sm:$0xff] }
0x1031   :  { %2037 = vmatmul.msk.f32.vlgmr.msra.gmra.mxu3 %vm944_vm2, %v1757_v21  ;;  %v1750_v26 = vadd.f32 %v1748_v24, %v1739_v43  ;;  %v1876_v24 = vld [vmem:[%s3228_s6 + $0x30] sm:$0xff] }
0x1033   :  { %v1752_v14 = vmul.f32 0.7978846, %v1750_v26  ;;  %v1875_v26 = vld [vmem:[%s3228_s6 + $0x20] sm:$0xff] }
0x1035   :  { %2229 = vtanh.f32 %v1752_v14  ;;  %v2139_v14 = vld [vmem:[%s3225_s3 + $0x2] ss:$0 sm:$0xff] }
0x103b   :  { %v2230_v15 = vpop.eup %2229 }
0x103c   :  { %v1756_v25 = vadd.f32 1.0, %v2230_v15 }
0x103e   :  { %v1758_v29 = vmul.f32 %v1756_v25, %v1742_v32 }
0x1040   :  { %2038 = vmatmul.msk.f32.gmra.mxu3 %vm944_vm2, %v1758_v29  ;;  %v2140_v29 = vld [vmem:[%s3225_s3 + $0x3] ss:$0 sm:$0xff] }
0x10b4   :  { %v1784_v37 = vpop.f32.mrf.mxu3 }
0x10b5   :  { %v1785_v45 = vadd.f32 %v2136_v31, %v1784_v37 }
0x10b7   :  { %v1790_v50 = vadd.f32 %v1785_v45, %v1708_v42 }
0x10b9   :  { %v1794_v38 = vsel %vm145_vm9, %v1790_v50, 0.0 }
0x10ba   :  { %1795 = vadd.xlane.f32.xlu0 %v1794_v38 }
0x10c3   :  { %v1787_v46 = vpop.f32.mrf.mxu3 }
0x10c4   :  { %v1788_v4 = vadd.f32 %v2136_v31, %v1787_v46 }
0x10c6   :  { %v1791_v5 = vadd.f32 %v1788_v4, %v1709_v6 }
0x10c8   :  { %v1797_v55 = vsel %vm145_vm9, %v1791_v5, 0.0 }
0x10c9   :  { %1798 = vadd.xlane.f32.xlu2 %v1797_v55 }
0x112d   :  { %v1796_v34 = vpop.xlane.xlu0 %1795 }
0x112e   :  { %v1800_v33 = vmul.f32 %v1796_v34, %v2405_v56 }
0x1130   :  { %v1802_v8 = vsub.f32 %v1790_v50, %v1800_v33 }
0x1132   :  { %v1804_v30 = vmul.f32 %v1802_v8, %v1802_v8 }
0x1134   :  { %v1806_v39 = vsel %vm145_vm9, %v1804_v30, 0.0 }
0x1135   :  { %1807 = vadd.xlane.f32.xlu2 %v1806_v39 }
0x113c   :  { %v1799_v54 = vpop.xlane.xlu2 %1798 }
0x113d   :  { %v1801_v7 = vmul.f32 %v1799_v54, %v2405_v56 }
0x113f   :  { %v1803_v36 = vsub.f32 %v1791_v5, %v1801_v7 }
0x1141   :  { %v1805_v51 = vmul.f32 %v1803_v36, %v1803_v36 }
0x1143   :  { %v1809_v35 = vsel %vm145_vm9, %v1805_v51, 0.0 }
0x1144   :  { %1810 = vadd.xlane.f32.xlu1 %v1809_v35 }
0x11a8   :  { %v1808_v48 = vpop.xlane.xlu2 %1807 }
0x11a9   :  { %v1812_v42 = vmul.f32 %v1808_v48, %v2405_v56 }
0x11ab   :  { %v1814_v44 = vadd.f32 1e-12, %v1812_v42 }
0x11ad   :  { %2231 = vrsqrt.f32 %v1814_v44  ;;  %vm1822_vm15 = vweird.f32 %v1814_v44 }
0x11b3   :  { %v2232_v62 = vpop.eup %2231 }
0x11b4   :  { %v1817_v13 = vmul.f32 %v2232_v62, %v1814_v44  ;;  %vm1823_vm2 = vweird.f32 %v2232_v62 }
0x11b5   :  { %vm1824_vm0 = vmor %vm1822_vm15, %vm1823_vm2 }
0x11b6   :  { %v1818_v6 = vmul.f32 %v2232_v62, %v1817_v13 }
0x11b7   :  { %v1811_v41 = vpop.xlane.xlu1 %1810 }
0x11b8   :  { %v1813_v53 = vmul.f32 %v1811_v41, %v2405_v56  ;;  %v1819_v60 = vmul.f32 0.5, %v1818_v6 }
0x11ba   :  { %v1815_v27 = vadd.f32 1e-12, %v1813_v53  ;;  %v1820_v10 = vsub.f32 1.5, %v1819_v60 }
0x11bc   :  { %2233 = vrsqrt.f32 %v1815_v27  ;;  %v1821_v56 = vmul.f32 %v2232_v62, %v1820_v10  ;;  %vm1832_vm5 = vweird.f32 %v1815_v27 }
0x11be   :  { %v1825_v11 = vsel %vm1824_vm0, %v2232_v62, %v1821_v56 }
0x11bf   :  { %v1836_v63 = vmul.f32 %v1825_v11, %v1802_v8 }
0x11c1   :  { %v1839_v18 = vmul.f32 %v2137_v9, %v1836_v63 }
0x11c2   :  { %v2234_v40 = vpop.eup %2233 }
0x11c3   :  { %v1827_v47 = vmul.f32 %v2234_v40, %v1815_v27  ;;  %vm1833_vm3 = vweird.f32 %v2234_v40  ;;  %v1842_v12 = vadd.f32 %v2138_v17, %v1839_v18 }
0x11c4   :  { %vm1834_vm6 = vmor %vm1832_vm5, %vm1833_vm3 }
0x11c5   :  { %v1828_v16 = vmul.f32 %v2234_v40, %v1827_v47 }
0x11c7   :  { %v1829_v0 = vmul.f32 0.5, %v1828_v16 }
0x11c9   :  { %v1830_v1 = vsub.f32 1.5, %v1829_v0 }
0x11cb   :  { %v1831_v2 = vmul.f32 %v2234_v40, %v1830_v1 }
0x11cd   :  { %v1835_v49 = vsel %vm1834_vm6, %v2234_v40, %v1831_v2 }
0x11ce   :  { %v1837_v43 = vmul.f32 %v1835_v49, %v1803_v36 }
0x11d0   :  { %v1840_v61 = vmul.f32 %v2137_v9, %v1837_v43 }
0x11d2   :  { %v1843_v22 = vadd.f32 %v2138_v17, %v1840_v61 }
0x11d4   :  { %1867 = vmatpush.msrb.mxu0 %v1843_v22 }
0x11d6   :  { %1868 = vmatpush.msrb.mxu0 %v1842_v12 }
0x11d7   :  { %2040 = vmatmul.msk.f32.vlgmr.msrb.gmra.mxu0 %vm90_vm4, %v2039_v19 }
0x11d8   :  { %1924 = vmatpush.msra.mxu0 %v1876_v24 }
0x11da   :  { %1925 = vmatpush.msra.mxu0 %v1875_v26 }
0x11dc   :  { %1926 = vmatpush.msra.mxu0 %v1874_v23 }
0x11de   :  { %1927 = vmatpush.msra.mxu0 %v1873_v28 }
0x1254   :  { %v1870_v21 = vpop.f32.mrf.mxu0 }
0x1255   :  { %2041 = vmatmul.msk.f32.vlgmr.msrb.gmra.mxu1 %vm145_vm9, %v1870_v21 }
0x12d2   :  { %v1903_v15 = vpop.f32.mrf.mxu1 }
0x12d3   :  { %v1904_v32 = vadd.f32 %v2139_v14, %v1903_v15 }
0x12d5   :  { %2235 = vtanh.f32 %v1904_v32 }
0x12db   :  { %v2236_v25 = vpop.eup %2235 }
0x12dc   :  { %2042 = vmatmul.msk.f32.vlgmr.msra.gmra.mxu0 %vm145_vm9, %v2236_v25 }
0x1359   :  { %v1929_v31 = vpop.f32.mrf.mxu0 }
0x135a   :  { %v1930_v37 = vadd.f32 %v2140_v29, %v1929_v31 }
0x135c   :  { %1932 = vst [vmem:[#allocation2] sm:$0x3] %v1930_v37 }
0x135d   :  { %1943 = dma.vmem_to_hbm [thread:$0]  %s1939_s27, 32, %s1941_s28, [#allocation3]  }
0x135e   :  { %2269 = dma.done.wait [#allocation3], 32  }
0x135f   :  { %2270 = vsyncadd [#allocation3], 4294967264 }
0x1360   :  { %1948 = vsyncpa [#allocation3], 1 }

</bundles_post_ra>
